<compile_context>
chip_gen: v6e
topology: v6e:2x2x1
jax: 0.10.0
libtpu: 0.0.40
codegen_flags: <defaults>
</compile_context>

<pallas_src>
import numpy as np
import jax
import jax.numpy as jnp
from jax.experimental import pallas as pl
from jax.experimental.pallas import tpu as pltpu

KERNEL_MUL = 2.0     # mmd.MMD_loss defaults
KERNEL_NUM = 5
BOT_WIDTH = 256      # bottleneck / classifier hidden width
CLF_PAD = 128        # classifier logits padded to a full 128-lane store


def _round_up(v, m):
    return ((v + m - 1) // m) * m


def conv_weight_to_mat(w):
    """PyTorch conv weight (Cout, Cin, 3, 3) -> (9*Cin, Cout), row order (ky, kx, cin)."""
    Cout, Cin, _, _ = w.shape
    return jnp.transpose(w, (2, 3, 1, 0)).reshape(9 * Cin, Cout)


# ----------------------------------------------------------------------------
# Glue (plain JAX / XLA): transposed, corner-major, lane-padded im2col views
# ----------------------------------------------------------------------------
def im2col_T_corners(x, Pp):
    """x: (NB, H, W, C) channels-last, NB even.  Returns (2, 9*C, 4*Pp):
    per source/target half, transposed im2col whose lane dim is ordered
    (pool-window corner, image-in-half, pool position); each corner block is
    zero-padded to Pp lanes (Pp a multiple of 128) so the kernel's corner-max
    slices are lane-tile aligned."""
    NB, H, W, C = x.shape
    NBh = NB // 2
    Hp, Wp = (H - 2) // 2, (W - 2) // 2
    Po = Hp * Wp
    xh = x.reshape(2, NBh, H, W, C)
    blocks = []
    for dy in range(2):
        for dx in range(2):
            taps = []
            for ky in range(3):
                for kx in range(3):
                    r0, c0 = dy + ky, dx + kx
                    taps.append(xh[:, :, r0:r0 + 2 * Hp - 1:2,
                                   c0:c0 + 2 * Wp - 1:2, :])     # (2, NBh, Hp, Wp, C)
            a = jnp.stack(taps, axis=-2)                         # (2, NBh, Hp, Wp, 9, C)
            a = a.reshape(2, NBh * Po, 9 * C)                    # rows=(img,pos) cols=(ky,kx,cin)
            a = jnp.transpose(a, (0, 2, 1))                      # (2, 9C, NBh*Po)
            a = jnp.pad(a, ((0, 0), (0, 0), (0, Pp - NBh * Po)))
            blocks.append(a)
    return jnp.concatenate(blocks, axis=-1)                      # (2, 9C, 4*Pp)


def im2col3_corners(x, CB):
    """Layer-3 im2col (its pooled output is 1x1): x (NB, H3, W3, C) -> (4*CB, 9*C),
    corner-major row blocks of CB rows (first NB real, rest zero) so the in-kernel
    corner-max slices start on 8-sublane boundaries."""
    NB, H, W, C = x.shape
    blocks = []
    for dy in range(2):
        for dx in range(2):
            p = x[:, dy:dy + 3, dx:dx + 3, :].reshape(NB, 9 * C)
            blocks.append(jnp.pad(p, ((0, CB - NB), (0, 0))))
    return jnp.concatenate(blocks, axis=0)


# ----------------------------------------------------------------------------
# Fused Conv(3x3, valid) + bias + MaxPool(2,2) + ReLU — transposed layout
# ----------------------------------------------------------------------------
def conv_pool_relu_T(cols, wT, b_col, *, Pp):
    """cols: (2, K9, 4*Pp) bf16 ; wT: (Cout, K9) bf16 ; b_col: (Cout, 1) f32.
    Returns (2, Cout, Pp) bf16 with (image, pool-position) flattened in lanes."""
    _, K9, L = cols.shape
    Cout = wT.shape[0]

    def kernel(x_ref, w_ref, b_ref, o_ref):
        # one MXU matmul covering all 4 pool-window corners of the whole half-batch
        m = jnp.dot(w_ref[...], x_ref[...], preferred_element_type=jnp.float32)
        # 2x2 max-pool: lane-tile-aligned corner slices, elementwise max on the VPU
        m = jnp.maximum(jnp.maximum(m[:, 0 * Pp:1 * Pp], m[:, 1 * Pp:2 * Pp]),
                        jnp.maximum(m[:, 2 * Pp:3 * Pp], m[:, 3 * Pp:4 * Pp]))
        # bias commutes with the max (same bias at every corner); then ReLU
        o_ref[...] = jnp.maximum(m + b_ref[...], 0.0).astype(o_ref.dtype)

    return pl.pallas_call(
        kernel,
        out_shape=jax.ShapeDtypeStruct((2, Cout, Pp), jnp.bfloat16),
        grid=(2,),                                    # source half / target half
        in_specs=[
            pl.BlockSpec((None, K9, L), lambda i: (i, 0, 0)),
            pl.BlockSpec((Cout, K9), lambda i: (0, 0)),
            pl.BlockSpec((Cout, 1), lambda i: (0, 0)),
        ],
        out_specs=pl.BlockSpec((None, Cout, Pp), lambda i: (i, 0, 0)),
        compiler_params=pltpu.CompilerParams(
            dimension_semantics=("parallel",)),       # v7x: one half per TensorCore
    )(cols, wT, b_col)


# ----------------------------------------------------------------------------
# Fused head: conv layer 3 + [classifier-hidden | bottleneck] Linear+ReLU,
#             classifier Linear (128-lane padded), multi-kernel Gaussian MMD
# ----------------------------------------------------------------------------
def head_forward(cols3, w3, b3, w_cat, b_cat, w2p, b2p, *, B, CB):
    """cols3: (4*CB, 288) bf16 corner-major.  Returns (clf_pad (B, CLF_PAD) f32,
    loss_row (1, CLF_PAD) f32 with the scalar loss broadcast across lanes)."""
    NB = 2 * B
    Wb = BOT_WIDTH

    def kernel(c3_ref, w3_ref, b3_ref, wc_ref, bc_ref, w2_ref, b2_ref,
               o_clf_ref, o_loss_ref):
        # ---- conv layer 3 (1x1 pooled): one matmul over all (corner, image) rows,
        #      corner max via 8-aligned sublane slices, bias, ReLU
        m3 = jnp.dot(c3_ref[...], w3_ref[...], preferred_element_type=jnp.float32)
        m3 = jnp.maximum(jnp.maximum(m3[0 * CB:1 * CB], m3[1 * CB:2 * CB]),
                         jnp.maximum(m3[2 * CB:3 * CB], m3[3 * CB:4 * CB]))
        feat = jnp.maximum(m3 + b3_ref[...], 0.0).astype(jnp.bfloat16)   # (CB, 64)

        # ---- shared first Linear: [classifier hidden | bottleneck(+BN eval folded)]
        y1 = jnp.dot(feat, wc_ref[...],
                     preferred_element_type=jnp.float32) + bc_ref[...]
        y1 = jnp.maximum(y1, 0.0)                  # (CB, 2*Wb); rows >= NB are padding

        # ---- classifier second Linear on source rows only (n_class padded to 128)
        clf_h = y1[:B, :Wb].astype(jnp.bfloat16)
        o_clf_ref[...] = (jnp.dot(clf_h, w2_ref[...],
                                  preferred_element_type=jnp.float32) + b2_ref[...])

        # ---- multi-kernel Gaussian MMD on the bottleneck features (rows [0, 2B))
        n = NB
        bot = y1[:NB, Wb:].astype(jnp.bfloat16)    # (n, Wb)
        bot_f = bot.astype(jnp.float32)
        g = jax.lax.dot_general(bot, bot, (((1,), (1,)), ((), ())),
                                preferred_element_type=jnp.float32)        # Gram (n, n)
        bb = bot_f * bot_f
        sq_c = jnp.sum(bb, axis=1, keepdims=True)                          # (n, 1)
        sq_r = jax.lax.dot_general(jnp.ones((1, Wb), jnp.float32), bb,
                                   (((1,), (1,)), ((), ())),
                                   preferred_element_type=jnp.float32)     # (1, n)
        l2 = jnp.maximum(sq_c + sq_r - 2.0 * g, 0.0)   # pairwise sq dists (clamp fp noise)
        tot = jnp.sum(jnp.sum(l2, axis=1, keepdims=True), axis=0, keepdims=True)
        bw = jnp.maximum(tot / float(n * n - n), 1e-12)      # guard coincident rows
        bw = bw / (KERNEL_MUL ** (KERNEL_NUM // 2))
        ksum = jnp.zeros_like(l2)
        for i in range(KERNEL_NUM):
            ksum = ksum + jnp.exp(-l2 / (bw * (KERNEL_MUL ** i)))
        # mean(XX + YY - XY - YX) over the (B,B) blocks == sum(sign * K) / B^2
        row = jax.lax.broadcasted_iota(jnp.int32, (n, n), 0)
        col = jax.lax.broadcasted_iota(jnp.int32, (n, n), 1)
        sign = jnp.where(row < B, 1.0, -1.0) * jnp.where(col < B, 1.0, -1.0)
        loss = jnp.sum(jnp.sum(ksum * sign, axis=1, keepdims=True),
                       axis=0, keepdims=True) / float(B * B)               # (1, 1)
        # lane-dense scalar emit: broadcast the loss across a full 128-lane row
        o_loss_ref[...] = loss + jnp.zeros((1, CLF_PAD), jnp.float32)

    vmem = lambda: pl.BlockSpec(memory_space=pltpu.MemorySpace.VMEM)
    clf_pad, loss_row = pl.pallas_call(
        kernel,
        out_shape=(jax.ShapeDtypeStruct((B, CLF_PAD), jnp.float32),
                   jax.ShapeDtypeStruct((1, CLF_PAD), jnp.float32)),
        in_specs=[vmem() for _ in range(7)],
        out_specs=(vmem(), vmem()),
    )(cols3, w3, b3, w_cat, b_cat, w2p, b2p)
    return clf_pad, loss_row


# ----------------------------------------------------------------------------
# Parameters (deterministic synthetic init, shapes per the module __init__)
# ----------------------------------------------------------------------------
def init_params(key, H, W, n_class):
    keys = jax.random.split(key, 6)
    conv_shapes = [(16, 1, 3, 3), (32, 16, 3, 3), (64, 32, 3, 3)]
    conv_mat, conv_b = [], []
    h, w = H, W
    for i, s in enumerate(conv_shapes):
        fan_in = s[1] * 9
        cw = (1.0 / np.sqrt(fan_in)) * jax.random.normal(keys[i], s, jnp.float32)
        conv_mat.append(conv_weight_to_mat(cw))                 # (9Cin, Cout) f32
        conv_b.append(jnp.full((s[0],), 0.01, jnp.float32))
        h, w = (h - 2) // 2, (w - 2) // 2
    feat = 64 * h * w   # base_network_output_size for our synthetic input

    kb, kc1, kc2 = jax.random.split(keys[5], 3)
    bn_scale = float(1.0 / np.sqrt(1.0 + 1e-5))   # BatchNorm1d eval: var=1, mean=0
    # bottleneck Linear: weight ~ N(0, 0.005), bias = 0.1  (BN scale folded in)
    bot_w_t = jnp.transpose(0.005 * jax.random.normal(kb, (BOT_WIDTH, feat),
                                                      jnp.float32)) * bn_scale
    bot_b = jnp.full((BOT_WIDTH,), 0.1, jnp.float32) * bn_scale
    # classifier Linear layers: weight ~ N(0, 0.01), bias = 0.0
    clf_w1_t = jnp.transpose(0.01 * jax.random.normal(kc1, (BOT_WIDTH, feat),
                                                      jnp.float32))
    clf_b1 = jnp.zeros((BOT_WIDTH,), jnp.float32)
    # fuse [classifier-hidden | bottleneck] into one lane-dense (feat, 512) weight
    w_cat = jnp.concatenate([clf_w1_t, bot_w_t], axis=1).astype(jnp.bfloat16)
    b_cat = jnp.concatenate([clf_b1, bot_b]).reshape(1, 2 * BOT_WIDTH)

    w2_t = jnp.transpose(0.01 * jax.random.normal(kc2, (n_class, BOT_WIDTH),
                                                  jnp.float32))
    w2_pad = jnp.pad(w2_t, ((0, 0), (0, CLF_PAD - n_class))).astype(jnp.bfloat16)
    b2_pad = jnp.zeros((1, CLF_PAD), jnp.float32)

    params = dict(
        conv1_wT=jnp.transpose(conv_mat[0]).astype(jnp.bfloat16),   # (16, 9)
        conv1_b=conv_b[0].reshape(-1, 1),
        conv2_wT=jnp.transpose(conv_mat[1]).astype(jnp.bfloat16),   # (32, 144)
        conv2_b=conv_b[1].reshape(-1, 1),
        conv3_w=conv_mat[2].astype(jnp.bfloat16),                   # (288, 64)
        conv3_b=conv_b[2].reshape(1, -1),
        head_w_cat=w_cat, head_b_cat=b_cat,
        clf_w2_pad=w2_pad, clf_b2_pad=b2_pad,
    )
    return params, feat


# ----------------------------------------------------------------------------
# Forward pass (mirrors Transfer_Net.forward, CNN branch, transfer_loss='mmd')
# ----------------------------------------------------------------------------
def base_features_chw_last(params, x_nchw):
    """Conv layers 1 & 2 via the fused transposed kernel. x: (NB,1,H,W).
    Returns (NB, H3, W3, 32) bf16 channels-last."""
    NB = x_nchw.shape[0]
    assert NB % 2 == 0
    xl = jnp.transpose(x_nchw, (0, 2, 3, 1)).astype(jnp.bfloat16)   # (NB, H, W, C)
    for wT, b in ((params["conv1_wT"], params["conv1_b"]),
                  (params["conv2_wT"], params["conv2_b"])):
        _, H, Wd, _ = xl.shape
        Hp, Wp = (H - 2) // 2, (Wd - 2) // 2
        Po, NBh = Hp * Wp, NB // 2
        Pp = _round_up(NBh * Po, 128)
        cols = im2col_T_corners(xl, Pp)                      # (2, 9C, 4*Pp)
        y = conv_pool_relu_T(cols, wT, b, Pp=Pp)             # (2, Cout, Pp)
        Cout = wT.shape[0]
        y = y[:, :, :NBh * Po].reshape(2, Cout, NBh, Hp, Wp)
        xl = jnp.transpose(y, (0, 2, 3, 4, 1)).reshape(NB, Hp, Wp, Cout)
    return xl


def transfer_net_forward(params, source, target, n_class):
    B = source.shape[0]
    NB = 2 * B
    x = jnp.concatenate([source, target], axis=0)            # (2B, 1, H, W)
    xl = base_features_chw_last(params, x)                   # (2B, H3, W3, 32)
    H3, W3 = xl.shape[1], xl.shape[2]
    assert (H3 - 2) // 2 == 1 and (W3 - 2) // 2 == 1, \
        "head fusion assumes the layer-3 pooled output is 1x1 (28x28 input)"
    CB = _round_up(NB, 8)
    cols3 = im2col3_corners(xl, CB)                          # (4*CB, 288)
    clf_pad, loss_row = head_forward(
        cols3, params["conv3_w"], params["conv3_b"],
        params["head_w_cat"], params["head_b_cat"],
        params["clf_w2_pad"], params["clf_b2_pad"], B=B, CB=CB)
    return clf_pad[:, :n_class], loss_row[0, 0]


if __name__ == "__main__":
    key = jax.random.PRNGKey(0)
    B, H, W, n_class = 2, 28, 28, 4
    k_src, k_tgt, k_par = jax.random.split(key, 3)
    source = jax.random.normal(k_src, (B, 1, H, W), jnp.float32)
    target = jax.random.normal(k_tgt, (B, 1, H, W), jnp.float32)

    params, feat = init_params(k_par, H, W, n_class)
    assert feat == 64

    fwd = jax.jit(lambda p, s, t: transfer_net_forward(p, s, t, n_class))
    source_clf, transfer_loss = fwd(params, source, target)
    source_clf, transfer_loss = jax.block_until_ready((source_clf, transfer_loss))

    assert source_clf.shape == (B, n_class)
    assert bool(jnp.all(jnp.isfinite(source_clf))) and bool(jnp.isfinite(transfer_loss))
    print("KERNEL_OK")
</pallas_src>

<mosaic_0001>
module attributes {stable_mosaic.version = 11 : i64} {
  func.func @kernel(%arg0: i32, %arg1: memref<1x9x1536xbf16, #tpu.memory_space<vmem>>, %arg2: memref<16x9xbf16, #tpu.memory_space<vmem>>, %arg3: memref<16x1xf32, #tpu.memory_space<vmem>>, %arg4: memref<1x16x384xbf16, #tpu.memory_space<vmem>>) attributes {dimension_semantics = [#tpu.dimension_semantics<parallel>], iteration_bounds = array<i64: 2>, scalar_prefetch = 0 : i64, scratch_operands = 0 : i64, tpu.core_type = #tpu.core_type<tc>, window_params = [{transform_indices = @transform_0, window_bounds = array<i64: 1, 9, 1536>}, {pipeline_mode = #tpu.pipeline_mode<synchronous>, transform_indices = @transform_1, window_bounds = array<i64: 16, 9>}, {pipeline_mode = #tpu.pipeline_mode<synchronous>, transform_indices = @transform_2, window_bounds = array<i64: 16, 1>}, {transform_indices = @transform_3, window_bounds = array<i64: 1, 16, 384>}]} {
    %c0 = arith.constant 0 : index
    %c0_0 = arith.constant 0 : index
    %0 = vector.load %arg2[%c0, %c0_0] : memref<16x9xbf16, #tpu.memory_space<vmem>>, vector<16x9xbf16>
    %c0_1 = arith.constant 0 : index
    %c0_2 = arith.constant 0 : index
    %c0_3 = arith.constant 0 : index
    %1 = vector.load %arg1[%c0_1, %c0_2, %c0_3] : memref<1x9x1536xbf16, #tpu.memory_space<vmem>>, vector<1x9x1536xbf16>
    %2 = vector.shape_cast %1 : vector<1x9x1536xbf16> to vector<9x1536xbf16>
    %cst = arith.constant dense<0.000000e+00> : vector<16x1536xf32>
    %3 = tpu.matmul %0, %2, %cst {dimension_numbers = #tpu.dot_dimension_numbers<[1], [0], [0], [1], [0, 0, 1, 1], [], []>} : vector<16x9xbf16>, vector<9x1536xbf16>, vector<16x1536xf32> -> vector<16x1536xf32>
    %4 = vector.extract_strided_slice %3 {offsets = [0, 0], sizes = [16, 384], strides = [1, 1]} : vector<16x1536xf32> to vector<16x384xf32>
    %5 = vector.extract_strided_slice %3 {offsets = [0, 384], sizes = [16, 384], strides = [1, 1]} : vector<16x1536xf32> to vector<16x384xf32>
    %6 = arith.maximumf %4, %5 : vector<16x384xf32>
    %7 = vector.extract_strided_slice %3 {offsets = [0, 768], sizes = [16, 384], strides = [1, 1]} : vector<16x1536xf32> to vector<16x384xf32>
    %8 = vector.extract_strided_slice %3 {offsets = [0, 1152], sizes = [16, 384], strides = [1, 1]} : vector<16x1536xf32> to vector<16x384xf32>
    %9 = arith.maximumf %7, %8 : vector<16x384xf32>
    %10 = arith.maximumf %6, %9 : vector<16x384xf32>
    %c0_4 = arith.constant 0 : index
    %c0_5 = arith.constant 0 : index
    %11 = vector.load %arg3[%c0_4, %c0_5] : memref<16x1xf32, #tpu.memory_space<vmem>>, vector<16x1xf32>
    %12 = vector.broadcast %11 : vector<16x1xf32> to vector<16x384xf32>
    %13 = arith.addf %10, %12 : vector<16x384xf32>
    %cst_6 = arith.constant 0.000000e+00 : f32
    %14 = vector.broadcast %cst_6 : f32 to vector<16x384xf32>
    %15 = arith.maximumf %13, %14 : vector<16x384xf32>
    %16 = arith.truncf %15 : vector<16x384xf32> to vector<16x384xbf16>
    %c0_7 = arith.constant 0 : index
    %c0_8 = arith.constant 0 : index
    %c0_9 = arith.constant 0 : index
    %17 = vector.load %arg4[%c0_7, %c0_8, %c0_9] : memref<1x16x384xbf16, #tpu.memory_space<vmem>>, vector<1x16x384xbf16>
    %18 = vector.shape_cast %17 : vector<1x16x384xbf16> to vector<16x384xbf16>
    %19 = vector.shape_cast %16 : vector<16x384xbf16> to vector<1x16x384xbf16>
    tpu.vector_store %arg4[%c0_7, %c0_8, %c0_9], %19 {strides = array<i32>} : memref<1x16x384xbf16, #tpu.memory_space<vmem>>, vector<1x16x384xbf16>,
    return
  }
  func.func @transform_0(%arg0: i32) -> (i32, i32, i32) {
    %c0_i32 = arith.constant 0 : i32
    %c0_i32_0 = arith.constant 0 : i32
    %c0_i32_1 = arith.constant 0 : i32
    return %arg0, %c0_i32, %c0_i32_0 : i32, i32, i32
  }
  func.func @transform_1(%arg0: i32) -> (i32, i32) {
    %c0_i32 = arith.constant 0 : i32
    %c0_i32_0 = arith.constant 0 : i32
    %c0_i32_1 = arith.constant 0 : i32
    return %c0_i32, %c0_i32_0 : i32, i32
  }
  func.func @transform_2(%arg0: i32) -> (i32, i32) {
    %c0_i32 = arith.constant 0 : i32
    %c0_i32_0 = arith.constant 0 : i32
    %c0_i32_1 = arith.constant 0 : i32
    return %c0_i32, %c0_i32_0 : i32, i32
  }
  func.func @transform_3(%arg0: i32) -> (i32, i32, i32) {
    %c0_i32 = arith.constant 0 : i32
    %c0_i32_0 = arith.constant 0 : i32
    %c0_i32_1 = arith.constant 0 : i32
    return %arg0, %c0_i32, %c0_i32_0 : i32, i32, i32
  }
}

module attributes {stable_mosaic.version = 11 : i64} {
  func.func @kernel(%arg0: i32, %arg1: memref<1x144x512xbf16, #tpu.memory_space<vmem>>, %arg2: memref<32x144xbf16, #tpu.memory_space<vmem>>, %arg3: memref<32x1xf32, #tpu.memory_space<vmem>>, %arg4: memref<1x32x128xbf16, #tpu.memory_space<vmem>>) attributes {dimension_semantics = [#tpu.dimension_semantics<parallel>], iteration_bounds = array<i64: 2>, scalar_prefetch = 0 : i64, scratch_operands = 0 : i64, tpu.core_type = #tpu.core_type<tc>, window_params = [{transform_indices = @transform_0, window_bounds = array<i64: 1, 144, 512>}, {pipeline_mode = #tpu.pipeline_mode<synchronous>, transform_indices = @transform_1, window_bounds = array<i64: 32, 144>}, {pipeline_mode = #tpu.pipeline_mode<synchronous>, transform_indices = @transform_2, window_bounds = array<i64: 32, 1>}, {transform_indices = @transform_3, window_bounds = array<i64: 1, 32, 128>}]} {
    %c0 = arith.constant 0 : index
    %c0_0 = arith.constant 0 : index
    %0 = vector.load %arg2[%c0, %c0_0] : memref<32x144xbf16, #tpu.memory_space<vmem>>, vector<32x144xbf16>
    %c0_1 = arith.constant 0 : index
    %c0_2 = arith.constant 0 : index
    %c0_3 = arith.constant 0 : index
    %1 = vector.load %arg1[%c0_1, %c0_2, %c0_3] : memref<1x144x512xbf16, #tpu.memory_space<vmem>>, vector<1x144x512xbf16>
    %2 = vector.shape_cast %1 : vector<1x144x512xbf16> to vector<144x512xbf16>
    %cst = arith.constant dense<0.000000e+00> : vector<32x512xf32>
    %3 = tpu.matmul %0, %2, %cst {dimension_numbers = #tpu.dot_dimension_numbers<[1], [0], [0], [1], [0, 0, 1, 1], [], []>} : vector<32x144xbf16>, vector<144x512xbf16>, vector<32x512xf32> -> vector<32x512xf32>
    %4 = vector.extract_strided_slice %3 {offsets = [0, 0], sizes = [32, 128], strides = [1, 1]} : vector<32x512xf32> to vector<32x128xf32>
    %5 = vector.extract_strided_slice %3 {offsets = [0, 128], sizes = [32, 128], strides = [1, 1]} : vector<32x512xf32> to vector<32x128xf32>
    %6 = arith.maximumf %4, %5 : vector<32x128xf32>
    %7 = vector.extract_strided_slice %3 {offsets = [0, 256], sizes = [32, 128], strides = [1, 1]} : vector<32x512xf32> to vector<32x128xf32>
    %8 = vector.extract_strided_slice %3 {offsets = [0, 384], sizes = [32, 128], strides = [1, 1]} : vector<32x512xf32> to vector<32x128xf32>
    %9 = arith.maximumf %7, %8 : vector<32x128xf32>
    %10 = arith.maximumf %6, %9 : vector<32x128xf32>
    %c0_4 = arith.constant 0 : index
    %c0_5 = arith.constant 0 : index
    %11 = vector.load %arg3[%c0_4, %c0_5] : memref<32x1xf32, #tpu.memory_space<vmem>>, vector<32x1xf32>
    %12 = vector.broadcast %11 : vector<32x1xf32> to vector<32x128xf32>
    %13 = arith.addf %10, %12 : vector<32x128xf32>
    %cst_6 = arith.constant 0.000000e+00 : f32
    %14 = vector.broadcast %cst_6 : f32 to vector<32x128xf32>
    %15 = arith.maximumf %13, %14 : vector<32x128xf32>
    %16 = arith.truncf %15 : vector<32x128xf32> to vector<32x128xbf16>
    %c0_7 = arith.constant 0 : index
    %c0_8 = arith.constant 0 : index
    %c0_9 = arith.constant 0 : index
    %17 = vector.load %arg4[%c0_7, %c0_8, %c0_9] : memref<1x32x128xbf16, #tpu.memory_space<vmem>>, vector<1x32x128xbf16>
    %18 = vector.shape_cast %17 : vector<1x32x128xbf16> to vector<32x128xbf16>
    %19 = vector.shape_cast %16 : vector<32x128xbf16> to vector<1x32x128xbf16>
    tpu.vector_store %arg4[%c0_7, %c0_8, %c0_9], %19 {strides = array<i32>} : memref<1x32x128xbf16, #tpu.memory_space<vmem>>, vector<1x32x128xbf16>,
    return
  }
  func.func @transform_0(%arg0: i32) -> (i32, i32, i32) {
    %c0_i32 = arith.constant 0 : i32
    %c0_i32_0 = arith.constant 0 : i32
    %c0_i32_1 = arith.constant 0 : i32
    return %arg0, %c0_i32, %c0_i32_0 : i32, i32, i32
  }
  func.func @transform_1(%arg0: i32) -> (i32, i32) {
    %c0_i32 = arith.constant 0 : i32
    %c0_i32_0 = arith.constant 0 : i32
    %c0_i32_1 = arith.constant 0 : i32
    return %c0_i32, %c0_i32_0 : i32, i32
  }
  func.func @transform_2(%arg0: i32) -> (i32, i32) {
    %c0_i32 = arith.constant 0 : i32
    %c0_i32_0 = arith.constant 0 : i32
    %c0_i32_1 = arith.constant 0 : i32
    return %c0_i32, %c0_i32_0 : i32, i32
  }
  func.func @transform_3(%arg0: i32) -> (i32, i32, i32) {
    %c0_i32 = arith.constant 0 : i32
    %c0_i32_0 = arith.constant 0 : i32
    %c0_i32_1 = arith.constant 0 : i32
    return %arg0, %c0_i32, %c0_i32_0 : i32, i32, i32
  }
}

module attributes {stable_mosaic.version = 11 : i64} {
  func.func @kernel(%arg0: memref<32x288xbf16, #tpu.memory_space<vmem>>, %arg1: memref<288x64xbf16, #tpu.memory_space<vmem>>, %arg2: memref<1x64xf32, #tpu.memory_space<vmem>>, %arg3: memref<64x512xbf16, #tpu.memory_space<vmem>>, %arg4: memref<1x512xf32, #tpu.memory_space<vmem>>, %arg5: memref<256x128xbf16, #tpu.memory_space<vmem>>, %arg6: memref<1x128xf32, #tpu.memory_space<vmem>>, %arg7: memref<2x128xf32, #tpu.memory_space<vmem>>, %arg8: memref<1x128xf32, #tpu.memory_space<vmem>>) attributes {dimension_semantics = [], scalar_prefetch = 0 : i64, scratch_operands = 0 : i64, tpu.core_type = #tpu.core_type<tc>} {
    %c0 = arith.constant 0 : index
    %c0_0 = arith.constant 0 : index
    %0 = vector.load %arg0[%c0, %c0_0] : memref<32x288xbf16, #tpu.memory_space<vmem>>, vector<32x288xbf16>
    %c0_1 = arith.constant 0 : index
    %c0_2 = arith.constant 0 : index
    %1 = vector.load %arg1[%c0_1, %c0_2] : memref<288x64xbf16, #tpu.memory_space<vmem>>, vector<288x64xbf16>
    %cst = arith.constant dense<0.000000e+00> : vector<32x64xf32>
    %2 = tpu.matmul %0, %1, %cst {dimension_numbers = #tpu.dot_dimension_numbers<[1], [0], [0], [1], [0, 0, 1, 1], [], []>} : vector<32x288xbf16>, vector<288x64xbf16>, vector<32x64xf32> -> vector<32x64xf32>
    %3 = vector.extract_strided_slice %2 {offsets = [0, 0], sizes = [8, 64], strides = [1, 1]} : vector<32x64xf32> to vector<8x64xf32>
    %4 = vector.extract_strided_slice %2 {offsets = [8, 0], sizes = [8, 64], strides = [1, 1]} : vector<32x64xf32> to vector<8x64xf32>
    %5 = arith.maximumf %3, %4 : vector<8x64xf32>
    %6 = vector.extract_strided_slice %2 {offsets = [16, 0], sizes = [8, 64], strides = [1, 1]} : vector<32x64xf32> to vector<8x64xf32>
    %7 = vector.extract_strided_slice %2 {offsets = [24, 0], sizes = [8, 64], strides = [1, 1]} : vector<32x64xf32> to vector<8x64xf32>
    %8 = arith.maximumf %6, %7 : vector<8x64xf32>
    %9 = arith.maximumf %5, %8 : vector<8x64xf32>
    %c0_3 = arith.constant 0 : index
    %c0_4 = arith.constant 0 : index
    %10 = vector.load %arg2[%c0_3, %c0_4] : memref<1x64xf32, #tpu.memory_space<vmem>>, vector<1x64xf32>
    %11 = vector.broadcast %10 : vector<1x64xf32> to vector<8x64xf32>
    %12 = arith.addf %9, %11 : vector<8x64xf32>
    %cst_5 = arith.constant 0.000000e+00 : f32
    %13 = vector.broadcast %cst_5 : f32 to vector<8x64xf32>
    %14 = arith.maximumf %12, %13 : vector<8x64xf32>
    %15 = arith.truncf %14 : vector<8x64xf32> to vector<8x64xbf16>
    %c0_6 = arith.constant 0 : index
    %c0_7 = arith.constant 0 : index
    %16 = vector.load %arg3[%c0_6, %c0_7] : memref<64x512xbf16, #tpu.memory_space<vmem>>, vector<64x512xbf16>
    %cst_8 = arith.constant dense<0.000000e+00> : vector<8x512xf32>
    %17 = tpu.matmul %15, %16, %cst_8 {dimension_numbers = #tpu.dot_dimension_numbers<[1], [0], [0], [1], [0, 0, 1, 1], [], []>} : vector<8x64xbf16>, vector<64x512xbf16>, vector<8x512xf32> -> vector<8x512xf32>
    %c0_9 = arith.constant 0 : index
    %c0_10 = arith.constant 0 : index
    %18 = vector.load %arg4[%c0_9, %c0_10] : memref<1x512xf32, #tpu.memory_space<vmem>>, vector<1x512xf32>
    %19 = vector.broadcast %18 : vector<1x512xf32> to vector<8x512xf32>
    %20 = arith.addf %17, %19 : vector<8x512xf32>
    %cst_11 = arith.constant 0.000000e+00 : f32
    %21 = vector.broadcast %cst_11 : f32 to vector<8x512xf32>
    %22 = arith.maximumf %20, %21 : vector<8x512xf32>
    %23 = vector.extract_strided_slice %22 {offsets = [0, 0], sizes = [2, 256], strides = [1, 1]} : vector<8x512xf32> to vector<2x256xf32>
    %24 = arith.truncf %23 : vector<2x256xf32> to vector<2x256xbf16>
    %c0_12 = arith.constant 0 : index
    %c0_13 = arith.constant 0 : index
    %25 = vector.load %arg5[%c0_12, %c0_13] : memref<256x128xbf16, #tpu.memory_space<vmem>>, vector<256x128xbf16>
    %cst_14 = arith.constant dense<0.000000e+00> : vector<2x128xf32>
    %26 = tpu.matmul %24, %25, %cst_14 {dimension_numbers = #tpu.dot_dimension_numbers<[1], [0], [0], [1], [0, 0, 1, 1], [], []>} : vector<2x256xbf16>, vector<256x128xbf16>, vector<2x128xf32> -> vector<2x128xf32>
    %c0_15 = arith.constant 0 : index
    %c0_16 = arith.constant 0 : index
    %27 = vector.load %arg6[%c0_15, %c0_16] : memref<1x128xf32, #tpu.memory_space<vmem>>, vector<1x128xf32>
    %28 = vector.broadcast %27 : vector<1x128xf32> to vector<2x128xf32>
    %29 = arith.addf %26, %28 : vector<2x128xf32>
    %c0_17 = arith.constant 0 : index
    %c0_18 = arith.constant 0 : index
    %30 = vector.load %arg7[%c0_17, %c0_18] : memref<2x128xf32, #tpu.memory_space<vmem>>, vector<2x128xf32>
    tpu.vector_store %arg7[%c0_17, %c0_18], %29 {strides = array<i32>} : memref<2x128xf32, #tpu.memory_space<vmem>>, vector<2x128xf32>,
    %31 = vector.extract_strided_slice %22 {offsets = [0, 256], sizes = [4, 256], strides = [1, 1]} : vector<8x512xf32> to vector<4x256xf32>
    %32 = arith.truncf %31 : vector<4x256xf32> to vector<4x256xbf16>
    %33 = arith.extf %32 : vector<4x256xbf16> to vector<4x256xf32>
    %cst_19 = arith.constant dense<0.000000e+00> : vector<4x4xf32>
    %34 = tpu.matmul %32, %32, %cst_19 {dimension_numbers = #tpu.dot_dimension_numbers<[1], [1], [0], [0], [0, 0, 1, 0], [], []>} : vector<4x256xbf16>, vector<4x256xbf16>, vector<4x4xf32> -> vector<4x4xf32>
    %35 = arith.mulf %33, %33 : vector<4x256xf32>
    %cst_20 = arith.constant dense<0.000000e+00> : vector<4xf32>
    %36 = vector.multi_reduction <add>, %35, %cst_20 [1] : vector<4x256xf32> to vector<4xf32>
    %37 = vector.shape_cast %36 : vector<4xf32> to vector<4x1xf32>
    %cst_21 = arith.constant 1.000000e+00 : f32
    %38 = vector.broadcast %cst_21 : f32 to vector<1x256xf32>
    %cst_22 = arith.constant dense<0.000000e+00> : vector<1x4xf32>
    %39 = tpu.matmul %38, %35, %cst_22 {dimension_numbers = #tpu.dot_dimension_numbers<[1], [1], [0], [0], [0, 0, 1, 0], [], []>} : vector<1x256xf32>, vector<4x256xf32>, vector<1x4xf32> -> vector<1x4xf32>
    %40 = vector.broadcast %37 : vector<4x1xf32> to vector<4x4xf32>
    %41 = vector.broadcast %39 : vector<1x4xf32> to vector<4x4xf32>
    %42 = arith.addf %40, %41 : vector<4x4xf32>
    %cst_23 = arith.constant 2.000000e+00 : f32
    %43 = vector.broadcast %cst_23 : f32 to vector<4x4xf32>
    %44 = arith.mulf %43, %34 : vector<4x4xf32>
    %45 = arith.subf %42, %44 : vector<4x4xf32>
    %cst_24 = arith.constant 0.000000e+00 : f32
    %46 = vector.broadcast %cst_24 : f32 to vector<4x4xf32>
    %47 = arith.maximumf %45, %46 : vector<4x4xf32>
    %cst_25 = arith.constant dense<0.000000e+00> : vector<4xf32>
    %48 = vector.multi_reduction <add>, %47, %cst_25 [1] : vector<4x4xf32> to vector<4xf32>
    %49 = vector.shape_cast %48 : vector<4xf32> to vector<4x1xf32>
    %cst_26 = arith.constant dense<0.000000e+00> : vector<1xf32>
    %50 = vector.multi_reduction <add>, %49, %cst_26 [0] : vector<4x1xf32> to vector<1xf32>
    %51 = vector.shape_cast %50 : vector<1xf32> to vector<1x1xf32>
    %cst_27 = arith.constant 1.200000e+01 : f32
    %52 = vector.broadcast %cst_27 : f32 to vector<1x1xf32>
    %53 = arith.divf %51, %52 : vector<1x1xf32>
    %cst_28 = arith.constant 9.99999996E-13 : f32
    %54 = vector.broadcast %cst_28 : f32 to vector<1x1xf32>
    %55 = arith.maximumf %53, %54 : vector<1x1xf32>
    %cst_29 = arith.constant 4.000000e+00 : f32
    %56 = vector.broadcast %cst_29 : f32 to vector<1x1xf32>
    %57 = arith.divf %55, %56 : vector<1x1xf32>
    %cst_30 = arith.constant 0.000000e+00 : f32
    %58 = vector.broadcast %cst_30 : f32 to vector<4x4xf32>
    %cst_31 = arith.constant 0.000000e+00 : f32
    %59 = vector.broadcast %cst_31 : f32 to vector<4x4xf32>
    %60 = arith.subf %59, %47 : vector<4x4xf32>
    %cst_32 = arith.constant 1.000000e+00 : f32
    %61 = vector.broadcast %cst_32 : f32 to vector<1x1xf32>
    %62 = arith.mulf %57, %61 : vector<1x1xf32>
    %63 = vector.broadcast %62 : vector<1x1xf32> to vector<4x4xf32>
    %64 = arith.divf %60, %63 : vector<4x4xf32>
    %65 = math.exp %64 : vector<4x4xf32>
    %66 = arith.addf %58, %65 : vector<4x4xf32>
    %cst_33 = arith.constant 0.000000e+00 : f32
    %67 = vector.broadcast %cst_33 : f32 to vector<4x4xf32>
    %68 = arith.subf %67, %47 : vector<4x4xf32>
    %cst_34 = arith.constant 2.000000e+00 : f32
    %69 = vector.broadcast %cst_34 : f32 to vector<1x1xf32>
    %70 = arith.mulf %57, %69 : vector<1x1xf32>
    %71 = vector.broadcast %70 : vector<1x1xf32> to vector<4x4xf32>
    %72 = arith.divf %68, %71 : vector<4x4xf32>
    %73 = math.exp %72 : vector<4x4xf32>
    %74 = arith.addf %66, %73 : vector<4x4xf32>
    %cst_35 = arith.constant 0.000000e+00 : f32
    %75 = vector.broadcast %cst_35 : f32 to vector<4x4xf32>
    %76 = arith.subf %75, %47 : vector<4x4xf32>
    %cst_36 = arith.constant 4.000000e+00 : f32
    %77 = vector.broadcast %cst_36 : f32 to vector<1x1xf32>
    %78 = arith.mulf %57, %77 : vector<1x1xf32>
    %79 = vector.broadcast %78 : vector<1x1xf32> to vector<4x4xf32>
    %80 = arith.divf %76, %79 : vector<4x4xf32>
    %81 = math.exp %80 : vector<4x4xf32>
    %82 = arith.addf %74, %81 : vector<4x4xf32>
    %cst_37 = arith.constant 0.000000e+00 : f32
    %83 = vector.broadcast %cst_37 : f32 to vector<4x4xf32>
    %84 = arith.subf %83, %47 : vector<4x4xf32>
    %cst_38 = arith.constant 8.000000e+00 : f32
    %85 = vector.broadcast %cst_38 : f32 to vector<1x1xf32>
    %86 = arith.mulf %57, %85 : vector<1x1xf32>
    %87 = vector.broadcast %86 : vector<1x1xf32> to vector<4x4xf32>
    %88 = arith.divf %84, %87 : vector<4x4xf32>
    %89 = math.exp %88 : vector<4x4xf32>
    %90 = arith.addf %82, %89 : vector<4x4xf32>
    %cst_39 = arith.constant 0.000000e+00 : f32
    %91 = vector.broadcast %cst_39 : f32 to vector<4x4xf32>
    %92 = arith.subf %91, %47 : vector<4x4xf32>
    %cst_40 = arith.constant 1.600000e+01 : f32
    %93 = vector.broadcast %cst_40 : f32 to vector<1x1xf32>
    %94 = arith.mulf %57, %93 : vector<1x1xf32>
    %95 = vector.broadcast %94 : vector<1x1xf32> to vector<4x4xf32>
    %96 = arith.divf %92, %95 : vector<4x4xf32>
    %97 = math.exp %96 : vector<4x4xf32>
    %98 = arith.addf %90, %97 : vector<4x4xf32>
    %99 = tpu.iota {dimensions = array<i32: 0>} : vector<4x4xi32>
    %100 = tpu.iota {dimensions = array<i32: 1>} : vector<4x4xi32>
    %c2_i32 = arith.constant 2 : i32
    %101 = vector.broadcast %c2_i32 : i32 to vector<4x4xi32>
    %102 = arith.cmpi slt, %99, %101 : vector<4x4xi32>
    %cst_41 = arith.constant 1.000000e+00 : f32
    %cst_42 = arith.constant -1.000000e+00 : f32
    %103 = vector.broadcast %cst_41 : f32 to vector<4x4xf32>
    %104 = vector.broadcast %cst_42 : f32 to vector<4x4xf32>
    %105 = arith.select %102, %103, %104 : vector<4x4xi1>, vector<4x4xf32>
    %c2_i32_43 = arith.constant 2 : i32
    %106 = vector.broadcast %c2_i32_43 : i32 to vector<4x4xi32>
    %107 = arith.cmpi slt, %100, %106 : vector<4x4xi32>
    %cst_44 = arith.constant 1.000000e+00 : f32
    %cst_45 = arith.constant -1.000000e+00 : f32
    %108 = vector.broadcast %cst_44 : f32 to vector<4x4xf32>
    %109 = vector.broadcast %cst_45 : f32 to vector<4x4xf32>
    %110 = arith.select %107, %108, %109 : vector<4x4xi1>, vector<4x4xf32>
    %111 = arith.mulf %105, %110 : vector<4x4xf32>
    %112 = arith.mulf %98, %111 : vector<4x4xf32>
    %cst_46 = arith.constant dense<0.000000e+00> : vector<4xf32>
    %113 = vector.multi_reduction <add>, %112, %cst_46 [1] : vector<4x4xf32> to vector<4xf32>
    %114 = vector.shape_cast %113 : vector<4xf32> to vector<4x1xf32>
    %cst_47 = arith.constant dense<0.000000e+00> : vector<1xf32>
    %115 = vector.multi_reduction <add>, %114, %cst_47 [0] : vector<4x1xf32> to vector<1xf32>
    %116 = vector.shape_cast %115 : vector<1xf32> to vector<1x1xf32>
    %cst_48 = arith.constant 4.000000e+00 : f32
    %117 = vector.broadcast %cst_48 : f32 to vector<1x1xf32>
    %118 = arith.divf %116, %117 : vector<1x1xf32>
    %cst_49 = arith.constant 0.000000e+00 : f32
    %119 = vector.broadcast %cst_49 : f32 to vector<1x128xf32>
    %120 = vector.broadcast %118 : vector<1x1xf32> to vector<1x128xf32>
    %121 = arith.addf %120, %119 : vector<1x128xf32>
    %c0_50 = arith.constant 0 : index
    %c0_51 = arith.constant 0 : index
    %122 = vector.load %arg8[%c0_50, %c0_51] : memref<1x128xf32, #tpu.memory_space<vmem>>, vector<1x128xf32>
    tpu.vector_store %arg8[%c0_50, %c0_51], %121 {strides = array<i32>} : memref<1x128xf32, #tpu.memory_space<vmem>>, vector<1x128xf32>,
    return
  }
}

</mosaic_0001>

<bundles_post_ra>
// kernel: _lambda_.3
= control target key start
LH: loop header
LB: loop body
LE: loop exit
PB: predicated region body
PF: predicated region fallthrough
CT: control target
= control target key end

     0   :  { %s760_s12 = smov 0   ;;  %s810_s0 = inlined_call_operand.vmem [shape: bf16[2,9,1536], index: 0, kind: input, shape index: {}]   ;;  %s811_s1 = inlined_call_operand.vmem [shape: bf16[16,9], index: 1, kind: input, shape index: {}]   ;;  %s812_s2 = inlined_call_operand.vmem [shape: f32[16,1], index: 2, kind: input, shape index: {}]   ;;  %s813_s3 = inlined_call_operand.vmem [shape: bf16[2,16,384], index: 3, kind: output, shape index: {}]  }
   0x1 LB: > { %s662_s13 = sadd.s32 4294967295, %s736_s12   ;;  %p666_p0 = scmp.ge.s32.totalorder %s736_s12, 1  ;;  %s736_s12 = sphi %s760_s12, %s13_s12  }
   0x2   : > { %p137_p1 = scmp.lt.s32.totalorder %s736_s12, 3 }
   0x4   : > { %p138_p2 = pnand %p666_p0, %p137_p1 }
   0x5   : > { %p161_p3 = scmp.lt.s32.totalorder (!%p138_p2), %s662_s13, 1 }
   0x6   : > { %141 = sbr.rel (%p138_p2) target bundleno = 249 (0xf9), region = 32 }
   0xb   : > { %vm243_vm0 = vcmask 1043456   ;;  %v738_v0 = vmov 0   ;;  %s815_s13 = smov (!%p161_p3, %s662_s13), 1  ;;  %v559_v1 = vld [vmem:[%s812_s2] sm:$0xff]  ;;  %vm244_vm1 = vcmask 1044480   ;;  %v739_v2 = vmov 65535  }
   0xc   : > { %315 = vmatprep.mubr.bf16.mxu0 %v738_v0  ;;  %358 = vmatprep.mubr.bf16.mxu1 %v738_v0  ;;  %v245_v3 = vsel %vm243_vm0, 4294967295, %v739_v2  ;;  %s698_s16 = smul.u32 96, %s815_s13  ;;  %v560_v4 = vld [vmem:[%s812_s2 + $0x8] sm:$0xff]  ;;  %v717_v12 = vld [vmem:[%s811_s1] sm:$0xff]   ;;  %vm239_vm2 = vcmask 72704  }
   0xd   : > { %710 = vset.pattern.permute.xlu0 %v738_v0  ;;  %v246_v5 = vsel %vm244_vm1, %v245_v3, 0  ;;  %s699_s24 = smul.u32 24, %s815_s13 }
   0xe   : > { %563 = vperm.xlu0 %710, %v559_v1   ;;  %s780_s21 = scalar_lea.vmem %s810_s0, %s698_s16 }
   0xf   : > { %v711_v6 = vld [vmem:[%s780_s21 + $0x4] ss:$48 sps:$4 sm:$0x1f]   ;;  %v713_v7 = vld [vmem:[%s780_s21 + $0xc] ss:$48 sps:$4 sm:$0x1f]   ;;  %s170_s27 = scalar_lea.vmem %s813_s3, %s699_s24 }
  0x10   : > { %v251_v8 = vand.u32 %v711_v6, %v246_v5  ;;  %v715_v9 = vld [vmem:[%s780_s21] ss:$48 sps:$4 sm:$0x1f]   ;;  %v716_v10 = vld [vmem:[%s780_s21 + $0x8] ss:$48 sps:$4 sm:$0x1f]   ;;  %v257_v11 = vand.u32 %v713_v7, %v246_v5 }
  0x11   : > { %v718_v13 = vld [vmem:[%s780_s21 + $0x10] ss:$48 sps:$4 sm:$0x1f]   ;;  %v248_v14 = vand.u32 %v715_v9, %v246_v5  ;;  %v254_v15 = vand.u32 %v716_v10, %v246_v5  ;;  %v720_v16 = vld [vmem:[%s780_s21 + $0x14] ss:$48 sps:$4 sm:$0x1f]  }
  0x12   : > { %568 = vperm.xlu0 %710, %v560_v4   ;;  %297 = vmatprep.subr.bf16.mxu0 %v251_v8  ;;  %v721_v17 = vld [vmem:[%s780_s21 + $0x18] ss:$48 sps:$4 sm:$0x1f]   ;;  %v723_v18 = vld [vmem:[%s780_s21 + $0x1c] ss:$48 sps:$4 sm:$0x1f]   ;;  %v263_v19 = vand.u32 %v720_v16, %v246_v5  ;;  %v260_v20 = vand.u32 %v718_v13, %v246_v5 }
  0x13   : > { %340 = vmatprep.subr.bf16.mxu1 %v257_v11  ;;  %298 = vmatpush1.bf16.msra.mxu0 %v248_v14  ;;  %v269_v21 = vand.u32 %v723_v18, %v246_v5  ;;  %v266_v22 = vand.u32 %v721_v17, %v246_v5  ;;  %v726_v23 = vld [vmem:[%s780_s21 + $0x24] ss:$48 sps:$4 sm:$0x1f]   ;;  %v729_v24 = vld [vmem:[%s780_s21 + $0x2c] ss:$48 sps:$4 sm:$0x1f]  }
  0x14   : > { %341 = vmatpush1.bf16.msra.mxu1 %v254_v15  ;;  %383 = vmatprep.subr.bf16.mxu0 %v263_v19  ;;  %v275_v25 = vand.u32 %v726_v23, %v246_v5  ;;  %v724_v26 = vld [vmem:[%s780_s21 + $0x20] ss:$48 sps:$4 sm:$0x1f]   ;;  %v727_v27 = vld [vmem:[%s780_s21 + $0x28] ss:$48 sps:$4 sm:$0x1f]   ;;  %v281_v28 = vand.u32 %v729_v24, %v246_v5 }
  0x15   : > { %426 = vmatprep.subr.bf16.mxu1 %v269_v21  ;;  %v272_v29 = vand.u32 %v724_v26, %v246_v5  ;;  %v278_v30 = vand.u32 %v727_v27, %v246_v5 }
  0x16   : > { %682 = vmatmul.mubr.msk.bf16.vlgmr.msra.gmra.mxu0 %vm239_vm2, %v717_v12 }
  0x17   : > { %683 = vmatmul.mubr.msk.bf16.vlgmr.msra.gmra.mxu1 %vm239_vm2, %v717_v12  ;;  %384 = vmatpush1.bf16.msra.mxu0 %v260_v20 }
  0x18   : > { %427 = vmatpush1.bf16.msra.mxu1 %v266_v22  ;;  %401 = vmatprep.mubr.bf16.mxu0 %v738_v0 }
  0x19   : > { %444 = vmatprep.mubr.bf16.mxu1 %v738_v0  ;;  %469 = vmatprep.subr.bf16.mxu0 %v275_v25 }
  0x1a   : > { %512 = vmatprep.subr.bf16.mxu1 %v281_v28 }
  0x1e   : > { %684 = vmatmul.mubr.msk.bf16.vlgmr.msra.gmra.mxu0 %vm239_vm2, %v717_v12 }
  0x1f   : > { %685 = vmatmul.mubr.msk.bf16.vlgmr.msra.gmra.mxu1 %vm239_vm2, %v717_v12  ;;  %470 = vmatpush1.bf16.msra.mxu0 %v272_v29 }
  0x20   : > { %513 = vmatpush1.bf16.msra.mxu1 %v278_v30  ;;  %487 = vmatprep.mubr.bf16.mxu0 %v738_v0 }
  0x21   : > { %530 = vmatprep.mubr.bf16.mxu1 %v738_v0 }
  0x26   : > { %686 = vmatmul.mubr.msk.bf16.vlgmr.msra.gmra.mxu0 %vm239_vm2, %v717_v12 }
  0x27   : > { %687 = vmatmul.mubr.msk.bf16.vlgmr.msra.gmra.mxu1 %vm239_vm2, %v717_v12 }
  0x89   : > { %v564_v58 = vpop.permute.xlu0 %563 }
  0x8d   : > { %v569_v14 = vpop.permute.xlu0 %568 }
  0xd6   : > { %v317_v31 = vpop.f32.mrf.mxu0 }
  0xd7   : > { %v360_v32 = vpop.f32.mrf.mxu1 }
  0xd8   : > { %v319_v33 = vpop.f32.mrf.mxu0 }
  0xd9   : > { %v362_v34 = vpop.f32.mrf.mxu1 }
  0xda   : > { %v321_v35 = vpop.f32.mrf.mxu0  ;;  %v541_v51 = vmax.f32 %v317_v31, %v362_v34 }
  0xdb   : > { %v364_v36 = vpop.f32.mrf.mxu1 }
  0xdc   : > { %v323_v37 = vpop.f32.mrf.mxu0 }
  0xdd   : > { %v366_v38 = vpop.f32.mrf.mxu1 }
  0xde   : > { %v403_v39 = vpop.f32.mrf.mxu0  ;;  %v544_v7 = vmax.f32 %v321_v35, %v366_v38 }
  0xdf   : > { %v446_v40 = vpop.f32.mrf.mxu1  ;;  %v542_v49 = vmax.f32 %v319_v33, %v403_v39 }
  0xe0   : > { %v405_v41 = vpop.f32.mrf.mxu0 }
  0xe1   : > { %v448_v42 = vpop.f32.mrf.mxu1  ;;  %v543_v54 = vmax.f32 %v360_v32, %v405_v41 }
  0xe2   : > { %v407_v43 = vpop.f32.mrf.mxu0 }
  0xe3   : > { %v450_v44 = vpop.f32.mrf.mxu1  ;;  %v545_v59 = vmax.f32 %v323_v37, %v407_v43 }
  0xe4   : > { %v409_v45 = vpop.f32.mrf.mxu0 }
  0xe5   : > { %v452_v46 = vpop.f32.mrf.mxu1  ;;  %v546_v8 = vmax.f32 %v364_v36, %v409_v45 }
  0xe6   : > { %v489_v47 = vpop.f32.mrf.mxu0 }
  0xe7   : > { %v532_v48 = vpop.f32.mrf.mxu1 }
  0xe8   : > { %v548_v50 = vmax.f32 %v448_v42, %v532_v48  ;;  %v491_v52 = vpop.f32.mrf.mxu0 }
  0xe9   : > { %v534_v53 = vpop.f32.mrf.mxu1  ;;  %v547_v56 = vmax.f32 %v446_v40, %v491_v52 }
  0xea   : > { %v554_v55 = vmax.f32 %v542_v49, %v548_v50  ;;  %v549_v57 = vmax.f32 %v489_v47, %v534_v53  ;;  %v493_v60 = vpop.f32.mrf.mxu0 }
  0xeb   : > { %v536_v61 = vpop.f32.mrf.mxu1  ;;  %v553_v62 = vmax.f32 %v541_v51, %v547_v56 }
  0xec   : > { %v555_v63 = vmax.f32 %v543_v54, %v549_v57  ;;  %v572_v0 = vadd.f32 %v564_v58, %v554_v55  ;;  %v551_v1 = vmax.f32 %v452_v46, %v536_v61  ;;  %v495_v2 = vpop.f32.mrf.mxu0 }
  0xed   : > { %v538_v3 = vpop.f32.mrf.mxu1  ;;  %v571_v4 = vadd.f32 %v564_v58, %v553_v62  ;;  %v550_v9 = vmax.f32 %v450_v44, %v495_v2 }
  0xee   : > { %v573_v5 = vadd.f32 %v564_v58, %v555_v63  ;;  %v557_v6 = vmax.f32 %v545_v59, %v551_v1  ;;  %v552_v10 = vmax.f32 %v493_v60, %v538_v3  ;;  %v578_v12 = vmax.f32 %v572_v0, 0.0 }
  0xef   : > { %v577_v11 = vmax.f32 %v571_v4, 0.0  ;;  %v556_v15 = vmax.f32 %v544_v7, %v550_v9 }
  0xf0   : > { %v579_v13 = vmax.f32 %v573_v5, 0.0  ;;  %v558_v16 = vmax.f32 %v546_v8, %v552_v10  ;;  %v575_v17 = vadd.f32 %v569_v14, %v557_v6 }
  0xf1   : > { %v694_v18 = vpack.c.bf16 %v578_v12, %v577_v11  ;;  %v574_v20 = vadd.f32 %v569_v14, %v556_v15 }
  0xf2   : > { %v695_v19 = vpack.c.bf16 %v579_v13, %v579_v13  ;;  %v576_v21 = vadd.f32 %v569_v14, %v558_v16  ;;  %v581_v23 = vmax.f32 %v575_v17, 0.0 }
  0xf3   : > { %603 = vst [vmem:[%s170_s27] sm:$0xff] %v694_v18  ;;  %v580_v22 = vmax.f32 %v574_v20, 0.0 }
  0xf4   : > { %604 = vst [vmem:[%s170_s27 + $0x8] sm:$0xf] %v695_v19  ;;  %v582_v24 = vmax.f32 %v576_v21, 0.0 }
  0xf5   : > { %v696_v25 = vpack.c.bf16 %v581_v23, %v580_v22 }
  0xf6   : > { %v697_v26 = vpack.c.bf16 %v582_v24, %v582_v24 }
  0xf7   : > { %605 = vst [vmem:[%s170_s27 + $0xc] sm:$0xff] %v696_v25 }
  0xf8   : > { %606 = vst [vmem:[%s170_s27 + $0x14] sm:$0xf] %v697_v26 }
  0xf9 PF: > { %s13_s12 = sadd.s32 1, %s736_s12  }
  0xfa   : > { %p10_p4 = scmp.ge.s32.totalorder %s13_s12, 4  }
  0xfc   :  { %12 = sbr.rel (!%p10_p4) target bundleno = 1 (0x1), region = 62 }

// kernel: _lambda_.4
= control target key start
LH: loop header
LB: loop body
LE: loop exit
PB: predicated region body
PF: predicated region fallthrough
CT: control target
= control target key end

     0   :  { %s817_s12 = smov 0   ;;  %s904_s0 = inlined_call_operand.vmem [shape: bf16[2,144,512], index: 0, kind: input, shape index: {}]   ;;  %s905_s1 = inlined_call_operand.vmem [shape: bf16[32,144], index: 1, kind: input, shape index: {}]   ;;  %s906_s2 = inlined_call_operand.vmem [shape: f32[32,1], index: 2, kind: input, shape index: {}]   ;;  %s907_s3 = inlined_call_operand.vmem [shape: bf16[2,32,128], index: 3, kind: output, shape index: {}]  }
   0x1 LB: > { %s642_s13 = sadd.s32 4294967295, %s794_s12   ;;  %p646_p0 = scmp.ge.s32.totalorder %s794_s12, 1  ;;  %s794_s12 = sphi %s817_s12, %s13_s12  }
   0x2   : > { %p137_p1 = scmp.lt.s32.totalorder %s794_s12, 3 }
   0x4   : > { %p138_p2 = pnand %p646_p0, %p137_p1 }
   0x5   : > { %p161_p3 = scmp.lt.s32.totalorder (!%p138_p2), %s642_s13, 1 }
   0x6   : > { %141 = sbr.rel (%p138_p2) target bundleno = 270 (0x10e), region = 32 }
   0xb   : > { %vm410_vm0 = vcmask 130048   ;;  %v784_v0 = vld [vmem:[%s905_s1 + $0x4] ss:$8 sps:$4 sm:$0xff]   ;;  %s909_s13 = smov (!%p161_p3, %s642_s13), 1  ;;  %v796_v1 = vmov 0   ;;  %v537_v3 = vld [vmem:[%s906_s2 + $0x10] sm:$0xff] }
   0xc   : > { %726 = vset.pattern.permute.xlu0 %v796_v1  ;;  %v535_v2 = vld [vmem:[%s906_s2] sm:$0xff]  ;;  %727 = vset.pattern.permute.xlu1 %v796_v1  ;;  %s716_s20 = smul.u32 288, %s909_s13  ;;  %v536_v4 = vld [vmem:[%s906_s2 + $0x8] sm:$0xff]  ;;  %v538_v5 = vld [vmem:[%s906_s2 + $0x18] sm:$0xff]  ;;  %s700_s7 = sshll.u32 %s909_s13, 4 }
   0xd   : > { %690 = vmatprep.mubr.msk.bf16.mxu0 %vm410_vm0, %v784_v0  ;;  %692 = vmatprep.mubr.msk.bf16.mxu1 %vm410_vm0, %v784_v0  ;;  %v782_v42 = vld [vmem:[%s905_s1] ss:$8 sps:$4 sm:$0xff]   ;;  %v785_v43 = vld [vmem:[%s905_s1 + $0x14] ss:$8 sps:$4 sm:$0xff]   ;;  %v787_v44 = vld [vmem:[%s905_s1 + $0x10] ss:$8 sps:$4 sm:$0xff]   ;;  %s170_s10 = scalar_lea.vmem %s907_s3, %s700_s7 }
   0xe   : > { %541 = vperm.xlu0 %726, %v535_v2   ;;  %551 = vperm.xlu1 %727, %v537_v3   ;;  %s848_s27 = scalar_lea.vmem %s904_s0, %s716_s20 }
   0xf   : > { %v728_v6 = vld [vmem:[%s848_s27 + $0xe4] ss:$16 sps:$4 sm:$0xff]   ;;  %v730_v7 = vld [vmem:[%s848_s27 + $0xec] ss:$16 sps:$4 sm:$0xff]   ;;  %v732_v8 = vld [vmem:[%s848_s27 + $0xe0] ss:$16 sps:$4 sm:$0xff]  }
  0x10   : > { %417 = vmatprep.subr.bf16.mxu0 %v728_v6  ;;  %v733_v9 = vld [vmem:[%s848_s27 + $0xe8] ss:$16 sps:$4 sm:$0xff]   ;;  %470 = vmatprep.subr.bf16.mxu1 %v730_v7  ;;  %v734_v10 = vld [vmem:[%s848_s27 + $0xc4] ss:$16 sps:$4 sm:$0xff]   ;;  %v736_v11 = vld [vmem:[%s848_s27 + $0xcc] ss:$16 sps:$4 sm:$0xff]  }
  0x11   : > { %418 = vmatpush1.bf16.msra.mxu0 %v732_v8  ;;  %471 = vmatpush1.bf16.msra.mxu1 %v733_v9  ;;  %v738_v12 = vld [vmem:[%s848_s27 + $0xc0] ss:$16 sps:$4 sm:$0xff]   ;;  %v739_v13 = vld [vmem:[%s848_s27 + $0xc8] ss:$16 sps:$4 sm:$0xff]   ;;  %v740_v14 = vld [vmem:[%s848_s27 + $0xa4] ss:$16 sps:$4 sm:$0xff]  }
  0x12   : > { %546 = vperm.xlu0 %726, %v536_v4   ;;  %556 = vperm.xlu1 %727, %v538_v5   ;;  %v742_v15 = vld [vmem:[%s848_s27 + $0xac] ss:$16 sps:$4 sm:$0xff]   ;;  %v744_v16 = vld [vmem:[%s848_s27 + $0xa0] ss:$16 sps:$4 sm:$0xff]   ;;  %v745_v17 = vld [vmem:[%s848_s27 + $0xa8] ss:$16 sps:$4 sm:$0xff]  }
  0x13   : > { %419 = vmatprep.subr.bf16.mxu0 %v734_v10  ;;  %472 = vmatprep.subr.bf16.mxu1 %v736_v11  ;;  %v746_v18 = vld [vmem:[%s848_s27 + $0x84] ss:$16 sps:$4 sm:$0xff]   ;;  %v748_v19 = vld [vmem:[%s848_s27 + $0x8c] ss:$16 sps:$4 sm:$0xff]   ;;  %v750_v20 = vld [vmem:[%s848_s27 + $0x80] ss:$16 sps:$4 sm:$0xff]  }
  0x14   : > { %v751_v21 = vld [vmem:[%s848_s27 + $0x88] ss:$16 sps:$4 sm:$0xff]   ;;  %v752_v22 = vld [vmem:[%s848_s27 + $0x64] ss:$16 sps:$4 sm:$0xff]   ;;  %v754_v23 = vld [vmem:[%s848_s27 + $0x6c] ss:$16 sps:$4 sm:$0xff]  }
  0x15   : > { %420 = vmatpush1.bf16.msra.mxu0 %v738_v12  ;;  %473 = vmatpush1.bf16.msra.mxu1 %v739_v13  ;;  %v756_v24 = vld [vmem:[%s848_s27 + $0x60] ss:$16 sps:$4 sm:$0xff]   ;;  %v757_v25 = vld [vmem:[%s848_s27 + $0x68] ss:$16 sps:$4 sm:$0xff]   ;;  %v758_v26 = vld [vmem:[%s848_s27 + $0x44] ss:$16 sps:$4 sm:$0xff]  }
  0x16   : > { %421 = vmatprep.subr.bf16.mxu0 %v740_v14  ;;  %474 = vmatprep.subr.bf16.mxu1 %v742_v15  ;;  %v760_v27 = vld [vmem:[%s848_s27 + $0x4c] ss:$16 sps:$4 sm:$0xff]   ;;  %v762_v28 = vld [vmem:[%s848_s27 + $0x40] ss:$16 sps:$4 sm:$0xff]   ;;  %v763_v29 = vld [vmem:[%s848_s27 + $0x48] ss:$16 sps:$4 sm:$0xff]  }
  0x17   : > { %v764_v30 = vld [vmem:[%s848_s27 + $0x24] ss:$16 sps:$4 sm:$0xff]   ;;  %v766_v31 = vld [vmem:[%s848_s27 + $0x2c] ss:$16 sps:$4 sm:$0xff]   ;;  %v768_v32 = vld [vmem:[%s848_s27 + $0x20] ss:$16 sps:$4 sm:$0xff]  }
  0x18   : > { %v769_v33 = vld [vmem:[%s848_s27 + $0x28] ss:$16 sps:$4 sm:$0xff]   ;;  %v770_v34 = vld [vmem:[%s848_s27 + $0x4] ss:$16 sps:$4 sm:$0xff]   ;;  %v772_v35 = vld [vmem:[%s848_s27 + $0xc] ss:$16 sps:$4 sm:$0xff]  }
  0x19   : > { %422 = vmatpush1.bf16.msra.mxu0 %v744_v16  ;;  %475 = vmatpush1.bf16.msra.mxu1 %v745_v17  ;;  %v774_v36 = vld [vmem:[%s848_s27] ss:$16 sps:$4 sm:$0xff]   ;;  %v775_v37 = vld [vmem:[%s848_s27 + $0x8] ss:$16 sps:$4 sm:$0xff]   ;;  %v776_v38 = vld [vmem:[%s848_s27 + $0x104] ss:$16 sps:$4 sm:$0xff]  }
  0x1a   : > { %423 = vmatprep.subr.bf16.mxu0 %v746_v18  ;;  %476 = vmatprep.subr.bf16.mxu1 %v748_v19  ;;  %v778_v39 = vld [vmem:[%s848_s27 + $0x10c] ss:$16 sps:$4 sm:$0xff]   ;;  %v780_v40 = vld [vmem:[%s848_s27 + $0x100] ss:$16 sps:$4 sm:$0xff]   ;;  %v781_v41 = vld [vmem:[%s848_s27 + $0x108] ss:$16 sps:$4 sm:$0xff]  }
  0x1d   : > { %424 = vmatpush1.bf16.msra.mxu0 %v750_v20  ;;  %477 = vmatpush1.bf16.msra.mxu1 %v751_v21 }
  0x1e   : > { %425 = vmatprep.subr.bf16.mxu0 %v752_v22  ;;  %478 = vmatprep.subr.bf16.mxu1 %v754_v23 }
  0x21   : > { %426 = vmatpush1.bf16.msra.mxu0 %v756_v24  ;;  %479 = vmatpush1.bf16.msra.mxu1 %v757_v25 }
  0x22   : > { %427 = vmatprep.subr.bf16.mxu0 %v758_v26  ;;  %480 = vmatprep.subr.bf16.mxu1 %v760_v27 }
  0x25   : > { %428 = vmatpush1.bf16.msra.mxu0 %v762_v28  ;;  %481 = vmatpush1.bf16.msra.mxu1 %v763_v29 }
  0x26   : > { %429 = vmatprep.subr.bf16.mxu0 %v764_v30  ;;  %482 = vmatprep.subr.bf16.mxu1 %v766_v31 }
  0x29   : > { %430 = vmatpush1.bf16.msra.mxu0 %v768_v32  ;;  %483 = vmatpush1.bf16.msra.mxu1 %v769_v33 }
  0x2a   : > { %431 = vmatprep.subr.bf16.mxu0 %v770_v34  ;;  %484 = vmatprep.subr.bf16.mxu1 %v772_v35 }
  0x2d   : > { %432 = vmatpush1.bf16.msra.mxu0 %v774_v36  ;;  %485 = vmatpush1.bf16.msra.mxu1 %v775_v37 }
  0x2e   : > { %447 = vmatprep.subr.bf16.mxu0 %v776_v38  ;;  %500 = vmatprep.subr.bf16.mxu1 %v778_v39 }
  0x31   : > { %448 = vmatpush2.bf16.msra.mxu0 %v780_v40  ;;  %501 = vmatpush2.bf16.msra.mxu1 %v781_v41 }
  0x34   : > { %450 = vmatmul.mubr.bf16.vlgmr.msra.gmra.mxu0 %v782_v42  ;;  %503 = vmatmul.mubr.bf16.vlgmr.msra.gmra.mxu1 %v782_v42 }
  0x35   : > { %691 = vmatprep.mubr.msk.bf16.mxu0 %vm410_vm0, %v785_v43  ;;  %693 = vmatprep.mubr.msk.bf16.mxu1 %vm410_vm0, %v785_v43 }
  0x3c   : > { %460 = vmatmul.mubr.bf16.gmra.mxu0 %v787_v44  ;;  %513 = vmatmul.mubr.bf16.gmra.mxu1 %v787_v44 }
  0x89   : > { %v542_v47 = vpop.permute.xlu0 %541  ;;  %v552_v2 = vpop.permute.xlu1 %551 }
  0x8d   : > { %v547_v59 = vpop.permute.xlu0 %546  ;;  %v557_v18 = vpop.permute.xlu1 %556 }
  0xf4   : > { %v451_v45 = vpop.f32.mrf.mxu0  ;;  %v504_v46 = vpop.f32.mrf.mxu1 }
  0xf6   : > { %v453_v48 = vpop.f32.mrf.mxu0  ;;  %v506_v49 = vpop.f32.mrf.mxu1 }
  0xf7   : > { %v523_v50 = vmax.f32 %v451_v45, %v453_v48  ;;  %v527_v51 = vmax.f32 %v504_v46, %v506_v49 }
  0xf8   : > { %v455_v52 = vpop.f32.mrf.mxu0  ;;  %v508_v53 = vpop.f32.mrf.mxu1 }
  0xf9   : > { %v531_v54 = vmax.f32 %v523_v50, %v527_v51 }
  0xfa   : > { %v457_v55 = vpop.f32.mrf.mxu0  ;;  %v510_v56 = vpop.f32.mrf.mxu1 }
  0xfb   : > { %v524_v57 = vmax.f32 %v455_v52, %v457_v55  ;;  %v528_v58 = vmax.f32 %v508_v53, %v510_v56  ;;  %v559_v62 = vadd.f32 %v542_v47, %v531_v54 }
  0xfc   : > { %v461_v60 = vpop.f32.mrf.mxu0  ;;  %v514_v61 = vpop.f32.mrf.mxu1 }
  0xfd   : > { %v532_v63 = vmax.f32 %v524_v57, %v528_v58  ;;  %v563_v8 = vmax.f32 %v559_v62, 0.0 }
  0xfe   : > { %v463_v0 = vpop.f32.mrf.mxu0  ;;  %v516_v1 = vpop.f32.mrf.mxu1 }
  0xff   : > { %v560_v3 = vadd.f32 %v547_v59, %v532_v63  ;;  %v525_v4 = vmax.f32 %v461_v60, %v463_v0  ;;  %v529_v5 = vmax.f32 %v514_v61, %v516_v1 }
 0x100   : > { %v465_v6 = vpop.f32.mrf.mxu0  ;;  %v518_v7 = vpop.f32.mrf.mxu1 }
 0x101   : > { %v564_v9 = vmax.f32 %v560_v3, 0.0  ;;  %v533_v10 = vmax.f32 %v525_v4, %v529_v5 }
 0x102   : > { %v467_v11 = vpop.f32.mrf.mxu0  ;;  %v520_v12 = vpop.f32.mrf.mxu1 }
 0x103   : > { %v708_v13 = vpack.c.bf16 %v564_v9, %v563_v8  ;;  %v526_v14 = vmax.f32 %v465_v6, %v467_v11  ;;  %v530_v15 = vmax.f32 %v518_v7, %v520_v12  ;;  %v561_v16 = vadd.f32 %v552_v2, %v533_v10 }
 0x105   : > { %709 = vst [vmem:[%s170_s10] sm:$0xff] %v708_v13   ;;  %v534_v17 = vmax.f32 %v526_v14, %v530_v15  ;;  %v565_v20 = vmax.f32 %v561_v16, 0.0 }
 0x107   : > { %v562_v19 = vadd.f32 %v557_v18, %v534_v17 }
 0x109   : > { %v566_v21 = vmax.f32 %v562_v19, 0.0 }
 0x10b   : > { %v713_v22 = vpack.c.bf16 %v566_v21, %v565_v20 }
 0x10d   : > { %715 = vst [vmem:[%s170_s10 + $0x8] sm:$0xff] %v713_v22  }
 0x10e PF: > { %s13_s12 = sadd.s32 1, %s794_s12  }
 0x10f   : > { %p10_p4 = scmp.ge.s32.totalorder %s13_s12, 4  }
 0x111   :  { %12 = sbr.rel (!%p10_p4) target bundleno = 1 (0x1), region = 62 }

// kernel: _lambda_.5
= control target key start
LH: loop header
LB: loop body
LE: loop exit
PB: predicated region body
PF: predicated region fallthrough
CT: control target
= control target key end

     0   :  { %14 = vsyncpa [#allocation3], 0  ;;  %vm213_vm0 = vcmask 261120   ;;  %s1453_s0 = inlined_call_operand.vmem [shape: bf16[32,288], index: 0, kind: input, shape index: {}]   ;;  %s1454_s1 = inlined_call_operand.vmem [shape: bf16[288,64], index: 1, kind: input, shape index: {}]   ;;  %s1455_s2 = inlined_call_operand.vmem [shape: f32[1,64], index: 2, kind: input, shape index: {}]   ;;  %s1456_s3 = inlined_call_operand.vmem [shape: bf16[64,512], index: 3, kind: input, shape index: {}]   ;;  %s1457_s4 = inlined_call_operand.vmem [shape: f32[1,512], index: 4, kind: input, shape index: {}]   ;;  %s1458_s5 = inlined_call_operand.vmem [shape: bf16[256,128], index: 5, kind: input, shape index: {}]   ;;  %s1459_s6 = inlined_call_operand.vmem [shape: f32[1,128], index: 6, kind: input, shape index: {}]   ;;  %s1460_s7 = inlined_call_operand.hbm [shape: f32[2,128], index: 7, kind: output, shape index: {0}]   ;;  %s1461_s8 = inlined_call_operand.hbm [shape: f32[1,128], index: 8, kind: output, shape index: {1}]  }
   0x1   :  { %v1073_v0 = vld [vmem:[%s1454_s1 + $0x78] sm:$0xff]   ;;  %v1075_v2 = vld [vmem:[%s1454_s1 + $0x70] sm:$0xff]   ;;  %v1077_v4 = vld [vmem:[%s1454_s1 + $0x68] sm:$0xff]  }
   0x2   :  { %v1074_v1 = vld [vmem:[%s1454_s1 + $0x38] sm:$0xff]   ;;  %1006 = vmatprep.subr.bf16.mxu0 %v1073_v0  ;;  %v1076_v3 = vld [vmem:[%s1454_s1 + $0x30] sm:$0xff]   ;;  %v1078_v5 = vld [vmem:[%s1454_s1 + $0x28] sm:$0xff]  }
   0x3   :  { %1007 = vmatpush3.bf16.msra.mxu0 %v1074_v1  ;;  %v1079_v6 = vld [vmem:[%s1454_s1 + $0x60] sm:$0xff]   ;;  %v1081_v8 = vld [vmem:[%s1454_s1 + $0x58] sm:$0xff]   ;;  %v1087_v9 = vld [vmem:[%s1454_s1 + $0x88] sm:$0xff]  }
   0x4   :  { %1008 = vmatprep.subr.bf16.mxu0 %v1075_v2  ;;  %v1080_v7 = vld [vmem:[%s1454_s1 + $0x20] sm:$0xff]   ;;  %v1082_v10 = vld [vmem:[%s1454_s1 + $0x18] sm:$0xff]   ;;  %v1083_v11 = vld [vmem:[%s1454_s1 + $0x50] sm:$0xff]   ;;  %1060 = vmatprep.subr.bf16.mxu1 %v1087_v9 }
   0x5   :  { %v1084_v12 = vld [vmem:[%s1454_s1 + $0x10] sm:$0xff]   ;;  %1061 = vmatpush3.bf16.msra.mxu1 %v1087_v9  ;;  %v1090_v13 = vld [vmem:[%s1454_s1 + $0x80] sm:$0xff]   ;;  %v1085_v14 = vld [vmem:[%s1454_s1 + $0x48] sm:$0xff]  }
   0x6   :  { %1062 = vmatprep.subr.bf16.mxu1 %v1090_v13  ;;  %v1093_v15 = vld [vmem:[%s1453_s0 + $0x4] ss:$12 sps:$4 sm:$0xff]   ;;  %v1094_v16 = vld [vmem:[%s1453_s0 + $0x8] ss:$12 sps:$4 sm:$0xff]   ;;  %v1095_v17 = vld [vmem:[%s1453_s0 + $0x20] ss:$12 sps:$4 sm:$0xff]  }
   0x7   :  { %1009 = vmatpush3.bf16.msra.mxu0 %v1076_v3  ;;  %252 = vmatprep.mubr.bf16.mxu0 %v1093_v15  ;;  %v1086_v18 = vld [vmem:[%s1454_s1 + $0x8] sm:$0xff]   ;;  %v1088_v19 = vld [vmem:[%s1454_s1 + $0x40] sm:$0xff]  }
   0x8   :  { %1010 = vmatprep.subr.bf16.mxu0 %v1077_v4  ;;  %1064 = vmatprep.mubr.msk.bf16.mxu1 %vm213_vm0, %v1094_v16  ;;  %v1089_v20 = vld [vmem:[%s1454_s1] sm:$0xff]   ;;  %v1096_v22 = vld [vmem:[%s1453_s0 + $0x1c] ss:$12 sps:$4 sm:$0xff]  }
   0x9   :  { %1063 = vmatpush3.bf16.msra.mxu1 %v1090_v13  ;;  %v1091_v21 = vld [vmem:[%s1453_s0] ss:$12 sps:$4 sm:$0xff]   ;;  %v1098_v23 = vld [vmem:[%s1453_s0 + $0x18] ss:$12 sps:$4 sm:$0xff]  }
   0xb   :  { %1011 = vmatpush3.bf16.msra.mxu0 %v1078_v5 }
   0xc   :  { %1012 = vmatprep.subr.bf16.mxu0 %v1079_v6  ;;  %1065 = vmatmul.mubr.msk.bf16.vlgmr.msra.gmra.mxu1 %vm213_vm0, %v1095_v17 }
   0xf   :  { %1013 = vmatpush3.bf16.msra.mxu0 %v1080_v7 }
  0x10   :  { %1014 = vmatprep.subr.bf16.mxu0 %v1081_v8 }
  0x13   :  { %1015 = vmatpush3.bf16.msra.mxu0 %v1082_v10 }
  0x14   :  { %1016 = vmatprep.subr.bf16.mxu0 %v1083_v11 }
  0x17   :  { %1017 = vmatpush3.bf16.msra.mxu0 %v1084_v12 }
  0x18   :  { %1018 = vmatprep.subr.bf16.mxu0 %v1085_v14 }
  0x1b   :  { %1019 = vmatpush3.bf16.msra.mxu0 %v1086_v18 }
  0x1c   :  { %1020 = vmatprep.subr.bf16.mxu0 %v1088_v19 }
  0x1f   :  { %1021 = vmatpush3.bf16.msra.mxu0 %v1089_v20 }
  0x22   :  { %253 = vmatmul.mubr.bf16.vlgmr.msra.gmra.mxu0 %v1091_v21 }
  0x23   :  { %260 = vmatprep.mubr.bf16.mxu0 %v1096_v22 }
  0x24   :  { %15 = vsyncpa [#allocation5], 0  ;;  %v1101_v24 = vld [vmem:[%s1456_s3 + $0x64] ss:$16 sps:$4 sm:$0xff]   ;;  %v1099_v25 = vld [vmem:[%s1456_s3 + $0x60] ss:$16 sps:$4 sm:$0xff]   ;;  %v349_v20 = vlaneseq }
  0x25   :  { %461 = vmatprep.subr.bf16.mxu1 %v1101_v24  ;;  %v1104_v26 = vld [vmem:[%s1456_s3 + $0x44] ss:$16 sps:$4 sm:$0xff]   ;;  %v1102_v27 = vld [vmem:[%s1456_s3 + $0x40] ss:$16 sps:$4 sm:$0xff]   ;;  %v1113_v32 = vld [vmem:[%s1456_s3 + $0x6c] ss:$16 sps:$4 sm:$0xff]  }
  0x26   :  { %462 = vmatpush1.bf16.msra.mxu1 %v1099_v25  ;;  %v1107_v28 = vld [vmem:[%s1456_s3 + $0x24] ss:$16 sps:$4 sm:$0xff]   ;;  %v1105_v29 = vld [vmem:[%s1456_s3 + $0x20] ss:$16 sps:$4 sm:$0xff]   ;;  %v1203_v33 = vmov 0   ;;  %v1123_v34 = vld [vmem:[%s1458_s5 + $0x78] sm:$0xff]  }
  0x27   :  { %463 = vmatprep.subr.bf16.mxu1 %v1104_v26  ;;  %v1110_v30 = vld [vmem:[%s1456_s3 + $0x4] ss:$16 sps:$4 sm:$0xff]   ;;  %v1108_v31 = vld [vmem:[%s1456_s3] ss:$16 sps:$4 sm:$0xff]   ;;  %485 = vmatprep.mubr.bf16.mxu1 %v1203_v33  ;;  %v1124_v35 = vld [vmem:[%s1458_s5 + $0x38] sm:$0xff]   ;;  %vm449_vm1 = vcmask 523264  }
  0x28   :  { %v1125_v36 = vld [vmem:[%s1458_s5 + $0x70] sm:$0xff]   ;;  %1038 = vmatprep.subr.bf16.mxu0 %v1123_v34  ;;  %v1127_v38 = vld [vmem:[%s1458_s5 + $0x68] sm:$0xff]   ;;  %v1129_v40 = vld [vmem:[%s1458_s5 + $0x60] sm:$0xff]   ;;  %v1427_v21 = vshrl.u32 %v349_v20, 7  ;;  %vm763_vm2 = vcmask 1043456   ;;  %vm847_vm3 = vcmask 27648  }
  0x29   :  { %1039 = vmatpush3.bf16.msra.mxu0 %v1124_v35  ;;  %v1126_v37 = vld [vmem:[%s1458_s5 + $0x30] sm:$0xff]   ;;  %v1128_v39 = vld [vmem:[%s1458_s5 + $0x28] sm:$0xff]   ;;  %v1130_v41 = vld [vmem:[%s1458_s5 + $0x20] sm:$0xff]  }
  0x2a   :  { %261 = vmatmul.mubr.bf16.gmra.mxu0 %v1098_v23  ;;  %464 = vmatpush1.bf16.msra.mxu1 %v1102_v27  ;;  %v1131_v42 = vld [vmem:[%s1458_s5 + $0x58] sm:$0xff]   ;;  %v1133_v44 = vld [vmem:[%s1458_s5 + $0x50] sm:$0xff]   ;;  %v970_v4 = vld [vmem:[%s1455_s2] ss:$0 sm:$0xff]  ;;  %v351_v22 = vsub.s32 0, %v1427_v21  ;;  %v355_v24 = vsub.s32 1, %v1427_v21 }
  0x2b   :  { %465 = vmatprep.subr.bf16.mxu1 %v1107_v28  ;;  %1040 = vmatprep.subr.bf16.mxu0 %v1125_v36  ;;  %v1132_v43 = vld [vmem:[%s1458_s5 + $0x18] sm:$0xff]   ;;  %v1134_v45 = vld [vmem:[%s1458_s5 + $0x10] sm:$0xff]   ;;  %v1135_v16 = vld [vmem:[%s1458_s5 + $0x48] sm:$0xff]   ;;  %vm897_vm4 = vcmp.lt.s32.totalorder %v1427_v21, 2 }
  0x2c   :  { %v1111_v8 = vld [vmem:[%s1456_s3 + $0x68] ss:$16 sps:$4 sm:$0xff]   ;;  %v1116_v10 = vld [vmem:[%s1456_s3 + $0x4c] ss:$16 sps:$4 sm:$0xff]   ;;  %v1137_v18 = vld [vmem:[%s1458_s5 + $0x40] sm:$0xff]  }
  0x2d   :  { %1041 = vmatpush3.bf16.msra.mxu0 %v1126_v37  ;;  %v1114_v11 = vld [vmem:[%s1456_s3 + $0x48] ss:$16 sps:$4 sm:$0xff]   ;;  %v1119_v12 = vld [vmem:[%s1456_s3 + $0x2c] ss:$16 sps:$4 sm:$0xff]   ;;  %v1138_v19 = vld [vmem:[%s1458_s5] sm:$0xff]   ;;  %v359_v37 = vsub.s32 2, %v1427_v21 }
  0x2e   :  { %466 = vmatpush1.bf16.msra.mxu1 %v1105_v29  ;;  %1042 = vmatprep.subr.bf16.mxu0 %v1127_v38  ;;  %v1117_v13 = vld [vmem:[%s1456_s3 + $0x28] ss:$16 sps:$4 sm:$0xff]   ;;  %v1122_v14 = vld [vmem:[%s1456_s3 + $0xc] ss:$16 sps:$4 sm:$0xff]   ;;  %v347_v23 = vld [vmem:[%s1457_s4] sm:$0xf] }
  0x2f   :  { %467 = vmatprep.subr.bf16.mxu1 %v1110_v30  ;;  %v1120_v15 = vld [vmem:[%s1456_s3 + $0x8] ss:$16 sps:$4 sm:$0xff]   ;;  %v352_v25 = vrot.slane %v347_v23, %v351_v22  ;;  %v356_v26 = vrot.slane %v347_v23, %v355_v24  ;;  %v363_v38 = vsub.s32 3, %v1427_v21 }
  0x30   :  { %v1136_v17 = vld [vmem:[%s1458_s5 + $0x8] sm:$0xff]  }
  0x31   :  { %1043 = vmatpush3.bf16.msra.mxu0 %v1128_v39  ;;  %v360_v39 = vrot.slane %v347_v23, %v359_v37 }
  0x32   :  { %468 = vmatpush1.bf16.msra.mxu1 %v1108_v31  ;;  %1044 = vmatprep.subr.bf16.mxu0 %v1129_v40  ;;  %v364_v40 = vrot.slane %v347_v23, %v363_v38 }
  0x33   :  { %502 = vmatprep.subr.bf16.mxu1 %v1113_v32 }
  0x35   :  { %1045 = vmatpush3.bf16.msra.mxu0 %v1130_v41 }
  0x36   :  { %1046 = vmatprep.subr.bf16.mxu0 %v1131_v42 }
  0x39   :  { %1047 = vmatpush3.bf16.msra.mxu0 %v1132_v43 }
  0x3a   :  { %1048 = vmatprep.subr.bf16.mxu0 %v1133_v44 }
  0x3d   :  { %1049 = vmatpush3.bf16.msra.mxu0 %v1134_v45 }
  0x3e   :  { %1050 = vmatprep.subr.bf16.mxu0 %v1135_v16 }
  0x41   :  { %1051 = vmatpush3.bf16.msra.mxu0 %v1136_v17 }
  0x42   :  { %1052 = vmatprep.subr.bf16.mxu0 %v1137_v18 }
  0x45   :  { %1053 = vmatpush3.bf16.msra.mxu0 %v1138_v19 }
  0xcc   :  { %v1066_v47 = vpop.f32.mrf.mxu1 }
  0xce   :  { %v303_v50 = vpop.f32.mrf.mxu1 }
  0xd0   :  { %v1067_v52 = vpop.f32.mrf.mxu1 }
  0xd2   :  { %v306_v56 = vpop.f32.mrf.mxu1 }
  0xe2   :  { %v1022_v46 = vpop.f32.mrf.mxu0 }
  0xe4   :  { %v1023_v48 = vpop.f32.mrf.mxu0 }
  0xe5   :  { %v1024_v58 = vadd.f32 %v1023_v48, %v1022_v46 }
  0xe6   :  { %v1025_v49 = vpop.f32.mrf.mxu0 }
  0xe7   :  { %v304_v63 = vadd.f32 %v1024_v58, %v303_v50  ;;  %v1204_v58 = vmov 1.0  }
  0xe8   :  { %v1026_v51 = vpop.f32.mrf.mxu0 }
  0xe9   :  { %v1027_v55 = vadd.f32 %v1026_v51, %v1025_v49 }
  0xea   :  { %v1028_v53 = vpop.f32.mrf.mxu0 }
  0xeb   :  { %v307_v61 = vadd.f32 %v1027_v55, %v306_v56 }
  0xec   :  { %v1029_v54 = vpop.f32.mrf.mxu0 }
  0xed   :  { %v1030_v59 = vadd.f32 %v1029_v54, %v1028_v53  ;;  %v318_v2 = vmax.f32 %v304_v63, %v307_v61  ;;  %v989_v61 = vld [vmem:[%s1459_s6] ss:$0 sm:$0xff]  ;;  %s1206_s6 = smov [#allocation2]  }
  0xee   :  { %v1031_v57 = vpop.f32.mrf.mxu0  ;;  %s922_s25 = sshll.u32 %s1206_s6, 4  ;;  %s923_s25 = int_to_ptr.vmem [resolvable:$true] %s922_s25 }
  0xef   :  { %v312_v0 = vadd.f32 %v1066_v47, %v1030_v59  ;;  %s1159_s26 = scalar_lea.vmem %s923_s25, 32  ;;  %p1164_p1 = scmp.lt.s32.totalorder %s923_s25, %s923_s25 }
  0xf0   :  { %v1032_v60 = vpop.f32.mrf.mxu0  ;;  %p1160_p0 = scmp.ne.s32.totalorder %s923_s25, %s1159_s26  ;;  %p1165_p2 = scmp.lt.s32.totalorder %s1159_s26, %s1159_s26 }
  0xf1   :  { %v1033_v62 = vadd.f32 %v1032_v60, %v1031_v57 }
  0xf2   :  { %p1166_p3 = por %p1165_p2, %p1164_p1 }
  0xf3   :  { %v315_v1 = vadd.f32 %v1067_v52, %v1033_v62 }
  0xf4   :  { %p1167_p4 = pnand %p1166_p3, %p1160_p0 }
  0xf5   :  { %v319_v3 = vmax.f32 %v312_v0, %v315_v1 }
  0xf7   :  { %v320_v5 = vmax.f32 %v318_v2, %v319_v3 }
  0xf9   :  { %v328_v6 = vadd.f32 %v970_v4, %v320_v5 }
  0xfb   :  { %v329_v7 = vmax.f32 %v328_v6, 0.0 }
  0xfd   :  { %v330_v9 = vpack.c.bf16 %v329_v7, %v329_v7 }
  0xff   :  { %987 = vmatmul.mubr.msk.bf16.vlgmr.msra.gmra.mxu1 %vm449_vm1, %v330_v9 }
 0x100   :  { %503 = vmatpush1.bf16.msra.mxu1 %v1111_v8  ;;  %526 = vmatprep.mubr.bf16.mxu1 %v1203_v33 }
 0x101   :  { %504 = vmatprep.subr.bf16.mxu1 %v1116_v10 }
 0x104   :  { %505 = vmatpush1.bf16.msra.mxu1 %v1114_v11 }
 0x105   :  { %506 = vmatprep.subr.bf16.mxu1 %v1119_v12 }
 0x108   :  { %507 = vmatpush1.bf16.msra.mxu1 %v1117_v13 }
 0x109   :  { %508 = vmatprep.subr.bf16.mxu1 %v1122_v14 }
 0x10c   :  { %509 = vmatpush1.bf16.msra.mxu1 %v1120_v15 }
 0x10f   :  { %988 = vmatmul.mubr.msk.bf16.vlgmr.msra.gmra.mxu1 %vm449_vm1, %v330_v9 }
 0x1bf   :  { %v487_v27 = vpop.f32.mrf.mxu1 }
 0x1c0   :  { %v488_v28 = vadd.f32 %v487_v27, %v352_v25 }
 0x1c1   :  { %v489_v29 = vpop.f32.mrf.mxu1 }
 0x1c2   :  { %v490_v30 = vadd.f32 %v489_v29, %v356_v26  ;;  %v535_v31 = vmax.f32 %v488_v28, 0.0 }
 0x1c3   :  { %v491_v32 = vpop.f32.mrf.mxu1 }
 0x1c4   :  { %v536_v33 = vmax.f32 %v490_v30, 0.0  ;;  %v539_v36 = vpack.c.bf16 %v535_v31, %v535_v31 }
 0x1c5   :  { %v492_v34 = vpop.f32.mrf.mxu1 }
 0x1c6   :  { %v540_v35 = vpack.c.bf16 %v536_v33, %v536_v33 }
 0x1c8   :  { %708 = vmatprep.mubr.bf16.mxu0 %v540_v35 }
 0x1c9   :  { %709 = vmatmul.mubr.bf16.vlgmr.msra.gmra.mxu0 %v539_v36 }
 0x1cf   :  { %v528_v41 = vpop.f32.mrf.mxu1 }
 0x1d0   :  { %v529_v42 = vadd.f32 %v528_v41, %v360_v39 }
 0x1d1   :  { %v530_v43 = vpop.f32.mrf.mxu1 }
 0x1d2   :  { %v537_v44 = vmax.f32 %v529_v42, 0.0  ;;  %v531_v45 = vadd.f32 %v530_v43, %v364_v40 }
 0x1d3   :  { %v532_v46 = vpop.f32.mrf.mxu1 }
 0x1d4   :  { %v717_v47 = vpack.c.bf16 %v537_v44, %v537_v44  ;;  %v538_v48 = vmax.f32 %v531_v45, 0.0 }
 0x1d5   :  { %v533_v49 = vpop.f32.mrf.mxu1 }
 0x1d6   :  { %v718_v50 = vpack.c.bf16 %v538_v48, %v538_v48  ;;  %v719_v51 = vunpack.c.l.bf16 %v717_v47  ;;  %v896_v48 = vand.u32 127, %v349_v20 }
 0x1d8   :  { %735 = vmatprep.subr.bf16.mxu1 %v718_v50  ;;  %753 = vmatprep.mubr.bf16.mxu1 %v718_v50  ;;  %v720_v52 = vunpack.c.l.bf16 %v718_v50  ;;  %v761_v53 = vmul.f32 %v719_v51, %v719_v51  ;;  %vm899_vm5 = vcmp.lt.s32.totalorder %v896_v48, 2 }
 0x1d9   :  { %736 = vmatpush1.bf16.xpose.msra.mxu1 %v717_v47 }
 0x1da   :  { %v762_v54 = vmul.f32 %v720_v52, %v720_v52  ;;  %v764_v55 = vsel %vm763_vm2, %v761_v53, 0.0 }
 0x1dc   :  { %799 = vmatprep.subr.mxu1 %v762_v54  ;;  %v765_v56 = vsel %vm763_vm2, %v762_v54, 0.0 }
 0x1dd   :  { %v766_v57 = vadd.f32 %v765_v56, %v764_v55 }
 0x1df   :  { %767 = vadd.xlane.f32.xlu0 %v766_v57 }
 0x1e0   :  { %754 = vmatmul.mubr.bf16.vlgmr.msra.gmra.mxu1 %v717_v47 }
 0x1e1   :  { %800 = vmatpush1.xpose.msra.mxu1 %v761_v53  ;;  %833 = vmatprep.mubr.f32.mxu1 %v1204_v58  ;;  %v1205_v53 = vmov -1.0  }
 0x1e2   :  { %v898_v54 = vsel %vm897_vm4, 1.0, %v1205_v53  ;;  %v900_v55 = vsel %vm899_vm5, 1.0, %v1205_v53 }
 0x1e8   :  { %834 = vmatmul.mubr.f32.vlgmr.msra.gmra.mxu1 %v1204_v58 }
 0x268   :  { %v768_v8 = vpop.xlane.xlu0 %767 }
 0x289   :  { %v1054_v59 = vpop.f32.mrf.mxu0 }
 0x28b   :  { %v1055_v60 = vpop.f32.mrf.mxu0 }
 0x28c   :  { %v1056_v62 = vadd.f32 %v1055_v60, %v1054_v59  ;;  %v901_v59 = vmul.f32 %v900_v55, %v898_v54 }
 0x28d   :  { %v1057_v63 = vpop.f32.mrf.mxu0 }
 0x28e   :  { %v711_v0 = vadd.f32 %v1056_v62, %v989_v61 }
 0x28f   :  { %v1058_v1 = vpop.f32.mrf.mxu0 }
 0x290   :  { %716 = vst [vmem:[#allocation2] sm:$0x3] %v711_v0 }
 0x2a0   :  { %v755_v2 = vpop.f32.mrf.mxu1 }
 0x2a1   :  { %v844_v10 = vmul.f32 2.0, %v755_v2 }
 0x2a2   :  { %v757_v3 = vpop.f32.mrf.mxu1 }
 0x2a4   :  { %v758_v4 = vpop.f32.mrf.mxu1 }
 0x2a6   :  { %v759_v5 = vpop.f32.mrf.mxu1 }
 0x2a8   :  { %v835_v6 = vpop.f32.mrf.mxu1 }
 0x2a9   :  { %v842_v7 = vrot.slane %v835_v6, %v351_v22 }
 0x2aa   :  { %v837_v9 = vpop.f32.mrf.mxu1 }
 0x2ab   :  { %v843_v11 = vadd.f32 %v842_v7, %v768_v8 }
 0x2ad   :  { %v845_v12 = vsub.f32 %v843_v11, %v844_v10 }
 0x2af   :  { %v846_v13 = vmax.f32 %v845_v12, 0.0 }
 0x2b1   :  { %v848_v14 = vsel %vm847_vm3, %v846_v13, 0.0  ;;  %v863_v32 = vsub.f32 0.0, %v846_v13 }
 0x2b2   :  { %849 = vadd.xlane.f32.xlu0 %v848_v14 }
 0x33b   :  { %v850_v15 = vpop.xlane.xlu0 %849 }
 0x33c   :  { %v851_v16 = vsel %vm763_vm2, %v850_v15, 0.0 }
 0x33d   :  { %v852_v17 = vrot.slane %v851_v16, 4 }
 0x33f   :  { %v853_v18 = vadd.f32 %v852_v17, %v851_v16 }
 0x341   :  { %v854_v19 = vrot.slane %v853_v18, 2 }
 0x343   :  { %v855_v23 = vadd.f32 %v854_v19, %v853_v18 }
 0x345   :  { %v856_v24 = vrot.slane %v855_v23, 1 }
 0x347   :  { %v857_v25 = vadd.f32 %v856_v24, %v855_v23 }
 0x349   :  { %v859_v22 = vmul.f32 0.083333336, %v857_v25 }
 0x34b   :  { %v860_v26 = vmax.f32 %v859_v22, 1e-12 }
 0x34d   :  { %v862_v27 = vmul.f32 0.25, %v860_v26 }
 0x34f   :  { %1139 = vrcp.f32 %v862_v27  ;;  %v869_v28 = vmul.f32 2.0, %v862_v27  ;;  %v875_v29 = vmul.f32 4.0, %v862_v27  ;;  %v881_v30 = vmul.f32 8.0, %v862_v27 }
 0x350   :  { %v887_v31 = vmul.f32 16.0, %v862_v27 }
 0x351   :  { %1141 = vrcp.f32 %v869_v28 }
 0x352   :  { %1143 = vrcp.f32 %v875_v29 }
 0x353   :  { %1145 = vrcp.f32 %v881_v30 }
 0x354   :  { %1147 = vrcp.f32 %v887_v31 }
 0x35c   :  { %v1140_v33 = vpop.eup %1139 }
 0x35d   :  { %v865_v34 = vmul.f32 %v1140_v33, %v863_v32 }
 0x35e   :  { %v1142_v35 = vpop.eup %1141 }
 0x35f   :  { %v1144_v36 = vpop.eup %1143  ;;  %v866_v37 = vmul.f32 1.442695, %v865_v34  ;;  %v871_v38 = vmul.f32 %v1142_v35, %v863_v32 }
 0x360   :  { %v1146_v39 = vpop.eup %1145  ;;  %v877_v40 = vmul.f32 %v1144_v36, %v863_v32 }
 0x361   :  { %v1148_v41 = vpop.eup %1147  ;;  %v872_v42 = vmul.f32 1.442695, %v871_v38  ;;  %v883_v43 = vmul.f32 %v1146_v39, %v863_v32  ;;  %1149 = vpow2.f32 %v866_v37 }
 0x362   :  { %v878_v44 = vmul.f32 1.442695, %v877_v40  ;;  %v889_v45 = vmul.f32 %v1148_v41, %v863_v32 }
 0x363   :  { %1151 = vpow2.f32 %v872_v42  ;;  %v884_v46 = vmul.f32 1.442695, %v883_v43 }
 0x364   :  { %1153 = vpow2.f32 %v878_v44  ;;  %v890_v47 = vmul.f32 1.442695, %v889_v45 }
 0x365   :  { %1155 = vpow2.f32 %v884_v46 }
 0x366   :  { %1157 = vpow2.f32 %v890_v47 }
 0x36e   :  { %v1150_v49 = vpop.eup %1149 }
 0x370   :  { %v1152_v50 = vpop.eup %1151 }
 0x371   :  { %v874_v51 = vadd.f32 %v1152_v50, %v1150_v49  ;;  %v1154_v52 = vpop.eup %1153 }
 0x372   :  { %v1156_v57 = vpop.eup %1155 }
 0x373   :  { %v880_v56 = vadd.f32 %v1154_v52, %v874_v51  ;;  %v1158_v60 = vpop.eup %1157 }
 0x375   :  { %v886_v58 = vadd.f32 %v1156_v57, %v880_v56 }
 0x377   :  { %v892_v61 = vadd.f32 %v1158_v60, %v886_v58 }
 0x379   :  { %v902_v62 = vmul.f32 %v901_v59, %v892_v61 }
 0x37b   :  { %v903_v63 = vsel %vm847_vm3, %v902_v62, 0.0 }
 0x37c   :  { %904 = vadd.xlane.f32.xlu1 %v903_v63 }
 0x37d   :  { %1170 = shalt.err (!%p1167_p4)
}
 0x37e   :  { %925 = dma.vmem_to_hbm [thread:$0]  %s923_s25, 32, %s1460_s7, [#allocation3]  }
 0x37f   :  { %s1207_s29 = smov [#allocation4]  }
 0x380   :  { %s932_s30 = sshll.u32 %s1207_s29, 4  ;;  %s933_s30 = int_to_ptr.vmem [resolvable:$true] %s932_s30 }
 0x381   :  { %s1179_s1 = scalar_lea.vmem %s933_s30, 16  ;;  %s1183_s9 = scalar_lea.vmem %s933_s30, 32 }
 0x382   :  { %p1180_p5 = scmp.ne.s32.totalorder %s933_s30, %s1179_s1  ;;  %p1184_p6 = scmp.lt.s32.totalorder %s933_s30, %s933_s30 }
 0x383   :  { %p1185_p7 = scmp.lt.s32.totalorder %s1183_s9, %s1179_s1 }
 0x385   :  { %p1186_p8 = por %p1185_p7, %p1184_p6 }
 0x387   :  { %p1187_p9 = pnand %p1186_p8, %p1180_p5 }
 0x405   :  { %v905_v20 = vpop.xlane.xlu1 %904 }
 0x406   :  { %v906_v21 = vsel %vm763_vm2, %v905_v20, 0.0 }
 0x407   :  { %v907_v0 = vrot.slane %v906_v21, 4 }
 0x409   :  { %v908_v1 = vadd.f32 %v907_v0, %v906_v21 }
 0x40b   :  { %v909_v2 = vrot.slane %v908_v1, 2 }
 0x40d   :  { %v910_v3 = vadd.f32 %v909_v2, %v908_v1 }
 0x40f   :  { %v911_v4 = vrot.slane %v910_v3, 1 }
 0x411   :  { %v912_v5 = vadd.f32 %v911_v4, %v910_v3 }
 0x413   :  { %v913_v6 = vmul.f32 0.25, %v912_v5 }
 0x415   :  { %915 = vst [vmem:[#allocation4] sm:$0x1] %v913_v6 }
 0x416   :  { %1190 = shalt.err (!%p1187_p9)
}
 0x417   :  { %935 = dma.vmem_to_hbm [thread:$0]  %s933_s30, 16, %s1461_s8, [#allocation5]  }
 0x418   :  { %1199 = dma.done.wait [#allocation3], 32  }
 0x419   :  { %1200 = vsyncadd [#allocation3], 4294967264 }
 0x41a   :  { %1201 = dma.done.wait [#allocation5], 16  }
 0x41b   :  { %1202 = vsyncadd [#allocation5], 4294967280 }
 0x41c   :  { %942 = vsyncpa [#allocation3], 1 }
 0x41d   :  { %943 = vsyncpa [#allocation5], 1 }

</bundles_post_ra>
